<compile_context>
chip_gen: v5e
topology: v5e:2x2
jax: 0.10.0
libtpu: 0.0.40
codegen_flags: <defaults>
</compile_context>

<pallas_src>
import numpy as np
import jax
import jax.numpy as jnp
from jax.experimental import pallas as pl
from jax.experimental.pallas import tpu as pltpu

# ---- model hyper-parameters (module defaults, small seq/batch for the demo) ----
S = 8                 # sequence length
N = 2                 # batch
M = S * N             # flattened rows, m = s*N + n
INPUT_SIZE = 1
D_MODEL = 64
HIDDEN = 128
NHEAD = 8
HEAD_DIM = D_MODEL // NHEAD
NUM_LAYERS = 2
OUTPUT_SIZE = 1
LN_EPS = 1e-5

# ---- packed f32 "vecs" slab row layout (lane-padded to 128) ----
ROW_PEB = 0                       # rows [0, M): pe + b_in, per flattened row m
ROW_WIN = M                       # input_fc weight (input_size == 1)
ROW_WDEC = M + 1                  # decoder weight
ROW_BDEC = M + 2                  # decoder bias (lane 0)
ROW_LAYER0 = M + 3                # per-layer blocks start here
LAYER_ROWS = 10
R_BQ, R_BK, R_BV, R_BO, R_B1, R_B2, R_LN1W, R_LN1B, R_LN2W, R_LN2B = range(10)
VEC_ROWS = ((ROW_LAYER0 + NUM_LAYERS * LAYER_ROWS + 7) // 8) * 8   # -> 40

# ---- packed bf16 weight slab `wa` lane layout (L, D_MODEL, WA_LANES) ----
WA_QKV = 0                        # [0:192]   = [Wq*scale | Wk | Wv]
WA_W1 = 256                       # [256:384] = W1   (vreg-aligned start)
WA_WO = 384                       # [384:448] = Wo   (vreg-aligned start)
WA_LANES = 448


def _layer_norm(x, w, b):
    mean = jnp.mean(x, axis=-1, keepdims=True)
    var = jnp.mean((x - mean) ** 2, axis=-1, keepdims=True)
    return (x - mean) * jax.lax.rsqrt(var + LN_EPS) * w + b


def encoder_kernel(src_ref, wa_ref, wb_ref, vecs_ref, mask_ref, out_ref):
    # TODO(synk): dropout (p=0.1) in pos-encoder and encoder layers is identity (eval mode).
    D, H = D_MODEL, NHEAD
    f32, bf16 = jnp.float32, jnp.bfloat16

    # input_fc (input_size == 1 -> broadcast multiply; its bias folded into peb)
    # + positional encoding.
    win = vecs_ref[ROW_WIN:ROW_WIN + 1, 0:D]            # (1, D)
    peb = vecs_ref[ROW_PEB:ROW_PEB + M, 0:D]            # (M, D)
    x = src_ref[...] * win + peb                        # (M, D) f32

    # Precomputed masks (hoisted, host-side constants).
    headmask = mask_ref[:, 0:D]                         # (H*M, D): 1 iff col in head h
    hm3 = headmask.reshape(H, M, D)                     # free leading split
    attn_bias = mask_ref[:, D:D + M]                    # (H*M, M): 0 same batch, -1e30 else

    for l in range(NUM_LAYERS):                         # static unroll, L = 2
        base = ROW_LAYER0 + l * LAYER_ROWS

        def vrow(off, width=D, _base=base):
            return vecs_ref[_base + off:_base + off + 1, 0:width]   # (1, width) f32

        # ---- fused QKV projection: ONE (M,D)@(D,3D) bf16 matmul, f32 acc ----
        xb = x.astype(bf16)
        qkv = jnp.dot(xb, wa_ref[l, :, WA_QKV:WA_QKV + 3 * D],
                      preferred_element_type=f32)                    # (M, 3D)
        q = qkv[:, 0:D] + vrow(R_BQ)          # 1/sqrt(head_dim) folded into Wq, bq
        k = qkv[:, D:2 * D] + vrow(R_BK)
        v = qkv[:, 2 * D:3 * D] + vrow(R_BV)

        # ---- packed multi-head attention (no per-head matmuls / transposes) ----
        # Row h*M+m of q_flat keeps only head-h columns of q[m] (mask in f32, exact).
        q_flat = (q[None, :, :] * hm3).reshape(H * M, D)             # (H*M, D) f32
        s = jnp.dot(q_flat.astype(bf16), k.T.astype(bf16),
                    preferred_element_type=f32)                      # (H*M, M) f32
        s = s + attn_bias                                            # mask add in f32
        s = s - jnp.max(s, axis=-1, keepdims=True)
        p = jnp.exp(s)
        p = p * pl.reciprocal(jnp.sum(p, axis=-1, keepdims=True), approx=True)

        o_all = jnp.dot(p.astype(bf16), v.astype(bf16),
                        preferred_element_type=f32)                  # (H*M, D) f32
        # Keep head-h columns of rows (h, m), merge heads via a leading-axis sum
        # (pure VPU adds; replaces the old XLU _merge_heads transpose).
        attn = jnp.sum(o_all.reshape(H, M, D) * hm3, axis=0)         # (M, D)

        attn = jnp.dot(attn.astype(bf16), wa_ref[l, :, WA_WO:WA_WO + D],
                       preferred_element_type=f32) + vrow(R_BO)
        x = _layer_norm(x + attn, vrow(R_LN1W), vrow(R_LN1B))

        # ---- feed-forward (Linear -> ReLU -> Linear) ----
        h1 = jnp.dot(x.astype(bf16), wa_ref[l, :, WA_W1:WA_W1 + HIDDEN],
                     preferred_element_type=f32) + vrow(R_B1, HIDDEN)
        h1 = jnp.maximum(h1, 0.0)
        ff = jnp.dot(h1.astype(bf16), wb_ref[l],
                     preferred_element_type=f32) + vrow(R_B2)
        x = _layer_norm(x + ff, vrow(R_LN2W), vrow(R_LN2B))

    # output[-1, :, :] == last N rows (s = S-1), then decoder Linear(d_model -> 1)
    # as a lane-dense VPU multiply-reduce.
    last = x[M - N:, :]                                              # (N, D)
    wdec = vecs_ref[ROW_WDEC:ROW_WDEC + 1, 0:D]
    bdec = vecs_ref[ROW_BDEC:ROW_BDEC + 1, 0:OUTPUT_SIZE]
    out = jnp.sum(last * wdec, axis=-1, keepdims=True) + bdec
    out_ref[...] = out.astype(out_ref.dtype)


@jax.jit
def transformer_forward(src, kp):
    """src: (S, N, input_size) as in the PyTorch module. Returns (N, output_size)."""
    src_flat = src.reshape(M, INPUT_SIZE)               # free reshape; row m = s*N + n
    vmem = pl.BlockSpec(memory_space=pltpu.MemorySpace.VMEM)
    return pl.pallas_call(
        encoder_kernel,
        out_shape=jax.ShapeDtypeStruct((N, OUTPUT_SIZE), jnp.float32),
        in_specs=[vmem] * 5,
        out_specs=vmem,
    )(src_flat, kp['wa'], kp['wb'], kp['vecs'], kp['masks'])


# ---------------- parameter construction (deterministic, synthetic) ----------------
def make_positional_encoding(max_len, d_model):
    position = np.arange(max_len, dtype=np.float32)[:, None]
    div_term = np.exp(np.arange(0, d_model, 2, dtype=np.float32)
                      * (-np.log(10000.0) / d_model))
    pe = np.zeros((max_len, d_model), np.float32)
    pe[:, 0::2] = np.sin(position * div_term)
    pe[:, 1::2] = np.cos(position * div_term)
    return jnp.asarray(pe)


def make_params(key):
    ks = jax.random.split(key, 16)

    def rnd(k, shape, scale=0.05):
        return jax.random.normal(k, shape, jnp.float32) * scale

    L = NUM_LAYERS
    return {
        'w_in':  rnd(ks[0], (D_MODEL, INPUT_SIZE), 0.5),
        'b_in':  rnd(ks[1], (D_MODEL,), 0.1),
        'pe':    make_positional_encoding(64, D_MODEL),
        'wqkv':  rnd(ks[2], (L, 3 * D_MODEL, D_MODEL)),
        'bqkv':  rnd(ks[3], (L, 3 * D_MODEL), 0.01),
        'wo':    rnd(ks[4], (L, D_MODEL, D_MODEL)),
        'bo':    rnd(ks[5], (L, D_MODEL), 0.01),
        'ln1w':  jnp.ones((L, D_MODEL), jnp.float32),
        'ln1b':  jnp.zeros((L, D_MODEL), jnp.float32),
        'w1':    rnd(ks[6], (L, HIDDEN, D_MODEL)),
        'b1':    rnd(ks[7], (L, HIDDEN), 0.01),
        'w2':    rnd(ks[8], (L, D_MODEL, HIDDEN)),
        'b2':    rnd(ks[9], (L, D_MODEL), 0.01),
        'ln2w':  jnp.ones((L, D_MODEL), jnp.float32),
        'ln2b':  jnp.zeros((L, D_MODEL), jnp.float32),
        'wdec':  rnd(ks[10], (OUTPUT_SIZE, D_MODEL), 0.1),
        'bdec':  rnd(ks[11], (1, OUTPUT_SIZE), 0.01),
    }


def prepare_kernel_params(p):
    """One-time host-side layout prep: pre-transpose weights so every in-kernel
    matmul is x @ W, fuse q/k/v into one 192-wide weight block, fold
    1/sqrt(head_dim) into Q and b_in into the PE table, pack all weights into a
    bf16 slab + all vectors into one lane-padded f32 slab, and precompute the
    head mask / same-batch attention bias."""
    D, HD, L = D_MODEL, HEAD_DIM, NUM_LAYERS
    scale = np.float32(1.0 / np.sqrt(HEAD_DIM))

    wqkv = np.asarray(p['wqkv'], np.float32)                    # (L, 3D, D)
    wq = np.transpose(wqkv[:, 0 * D:1 * D, :], (0, 2, 1)) * scale
    wk = np.transpose(wqkv[:, 1 * D:2 * D, :], (0, 2, 1))
    wv = np.transpose(wqkv[:, 2 * D:3 * D, :], (0, 2, 1))
    wot = np.transpose(np.asarray(p['wo'], np.float32), (0, 2, 1))   # (L, D, D)
    w1t = np.transpose(np.asarray(p['w1'], np.float32), (0, 2, 1))   # (L, D, HIDDEN)
    w2t = np.transpose(np.asarray(p['w2'], np.float32), (0, 2, 1))   # (L, HIDDEN, D)

    wa = np.zeros((L, D, WA_LANES), np.float32)
    wa[:, :, 0:D] = wq
    wa[:, :, D:2 * D] = wk
    wa[:, :, 2 * D:3 * D] = wv
    wa[:, :, WA_W1:WA_W1 + HIDDEN] = w1t
    wa[:, :, WA_WO:WA_WO + D] = wot

    bqkv = np.asarray(p['bqkv'], np.float32)
    peb = np.repeat(np.asarray(p['pe'], np.float32)[:S], N, axis=0) \
        + np.asarray(p['b_in'], np.float32)                     # (M, D), m = s*N + n

    vecs = np.zeros((VEC_ROWS, 128), np.float32)
    vecs[ROW_PEB:ROW_PEB + M, 0:D] = peb
    vecs[ROW_WIN, 0:D] = np.asarray(p['w_in'], np.float32)[:, 0]
    vecs[ROW_WDEC, 0:D] = np.asarray(p['wdec'], np.float32)[0]
    vecs[ROW_BDEC, 0:OUTPUT_SIZE] = np.asarray(p['bdec'], np.float32)[0]
    for l in range(L):
        base = ROW_LAYER0 + l * LAYER_ROWS
        vecs[base + R_BQ, 0:D] = bqkv[l, 0 * D:1 * D] * scale
        vecs[base + R_BK, 0:D] = bqkv[l, 1 * D:2 * D]
        vecs[base + R_BV, 0:D] = bqkv[l, 2 * D:3 * D]
        vecs[base + R_BO, 0:D] = np.asarray(p['bo'], np.float32)[l]
        vecs[base + R_B1, 0:HIDDEN] = np.asarray(p['b1'], np.float32)[l]
        vecs[base + R_B2, 0:D] = np.asarray(p['b2'], np.float32)[l]
        vecs[base + R_LN1W, 0:D] = np.asarray(p['ln1w'], np.float32)[l]
        vecs[base + R_LN1B, 0:D] = np.asarray(p['ln1b'], np.float32)[l]
        vecs[base + R_LN2W, 0:D] = np.asarray(p['ln2w'], np.float32)[l]
        vecs[base + R_LN2B, 0:D] = np.asarray(p['ln2b'], np.float32)[l]

    # masks (H*M, D + M): [:, :D] head mask (1 iff column belongs to the row's head),
    # [:, D:D+M] additive bias (0 iff same batch element, else -1e30).
    rows = np.arange(NHEAD * M)
    h_of_row = rows // M
    m_of_row = rows % M
    headmask = (np.arange(D)[None, :] // HD == h_of_row[:, None]).astype(np.float32)
    same_batch = (m_of_row[:, None] % N) == (np.arange(M)[None, :] % N)
    attn_bias = np.where(same_batch, np.float32(0.0), np.float32(-1e30))
    masks = np.concatenate([headmask, attn_bias.astype(np.float32)], axis=1)

    return {
        'wa':    jnp.asarray(wa, jnp.bfloat16),      # (L, D, 448)
        'wb':    jnp.asarray(w2t, jnp.bfloat16),     # (L, HIDDEN, D)
        'vecs':  jnp.asarray(vecs, jnp.float32),     # (40, 128)
        'masks': jnp.asarray(masks, jnp.float32),    # (128, 80)
    }


# ---------------- pure-JAX reference (eval-mode PyTorch semantics) ----------------
def reference_forward(src, p):
    x = jnp.einsum('sni,di->snd', src, p['w_in']) + p['b_in']
    x = x + p['pe'][:src.shape[0]][:, None, :]
    x = jnp.transpose(x, (1, 0, 2))                                # (N, S, D)
    for l in range(NUM_LAYERS):
        qkv = x @ p['wqkv'][l].T + p['bqkv'][l]
        q, k, v = jnp.split(qkv, 3, axis=-1)
        q = q.reshape(N, S, NHEAD, HEAD_DIM) / np.sqrt(HEAD_DIM)
        k = k.reshape(N, S, NHEAD, HEAD_DIM)
        v = v.reshape(N, S, NHEAD, HEAD_DIM)
        s = jnp.einsum('nqhd,nkhd->nhqk', q, k)
        a = jax.nn.softmax(s, axis=-1)
        o = jnp.einsum('nhqk,nkhd->nqhd', a, v).reshape(N, S, D_MODEL)
        o = o @ p['wo'][l].T + p['bo'][l]
        x = _layer_norm(x + o, p['ln1w'][l], p['ln1b'][l])
        h1 = jax.nn.relu(x @ p['w1'][l].T + p['b1'][l])
        ff = h1 @ p['w2'][l].T + p['b2'][l]
        x = _layer_norm(x + ff, p['ln2w'][l], p['ln2b'][l])
    return x[:, S - 1, :] @ p['wdec'].T + p['bdec']


if __name__ == "__main__":
    key = jax.random.PRNGKey(0)
    k_params, k_src = jax.random.split(key)
    params = make_params(k_params)
    kparams = prepare_kernel_params(params)
    src = jax.random.normal(k_src, (S, N, INPUT_SIZE), jnp.float32)

    out = jax.block_until_ready(transformer_forward(src, kparams))
    assert out.shape == (N, OUTPUT_SIZE)

    ref = jax.block_until_ready(reference_forward(src, params))
    np.testing.assert_allclose(np.asarray(out), np.asarray(ref), rtol=5e-2, atol=5e-2)
    print("KERNEL_OK")
</pallas_src>

<mosaic_0001>
module attributes {stable_mosaic.version = 11 : i64} {
  func.func @encoder_kernel(%arg0: memref<16x1xf32, #tpu.memory_space<vmem>>, %arg1: memref<2x64x448xbf16, #tpu.memory_space<vmem>>, %arg2: memref<2x128x64xbf16, #tpu.memory_space<vmem>>, %arg3: memref<40x128xf32, #tpu.memory_space<vmem>>, %arg4: memref<128x80xf32, #tpu.memory_space<vmem>>, %arg5: memref<2x1xf32, #tpu.memory_space<vmem>>) attributes {dimension_semantics = [], scalar_prefetch = 0 : i64, scratch_operands = 0 : i64, tpu.core_type = #tpu.core_type<tc>} {
    %c16 = arith.constant 16 : index
    %c0 = arith.constant 0 : index
    %0 = vector.load %arg3[%c16, %c0] : memref<40x128xf32, #tpu.memory_space<vmem>>, vector<1x64xf32>
    %c0_0 = arith.constant 0 : index
    %c0_1 = arith.constant 0 : index
    %1 = vector.load %arg3[%c0_0, %c0_1] : memref<40x128xf32, #tpu.memory_space<vmem>>, vector<16x64xf32>
    %c0_2 = arith.constant 0 : index
    %c0_3 = arith.constant 0 : index
    %2 = vector.load %arg0[%c0_2, %c0_3] : memref<16x1xf32, #tpu.memory_space<vmem>>, vector<16x1xf32>
    %3 = vector.broadcast %2 : vector<16x1xf32> to vector<16x64xf32>
    %4 = vector.broadcast %0 : vector<1x64xf32> to vector<16x64xf32>
    %5 = arith.mulf %3, %4 : vector<16x64xf32>
    %6 = arith.addf %5, %1 : vector<16x64xf32>
    %c0_4 = arith.constant 0 : index
    %c0_5 = arith.constant 0 : index
    %7 = vector.load %arg4[%c0_4, %c0_5] : memref<128x80xf32, #tpu.memory_space<vmem>>, vector<128x64xf32>
    %8 = vector.shape_cast %7 : vector<128x64xf32> to vector<8x16x64xf32>
    %c0_6 = arith.constant 0 : index
    %c64 = arith.constant 64 : index
    %9 = vector.load %arg4[%c0_6, %c64] : memref<128x80xf32, #tpu.memory_space<vmem>>, vector<128x16xf32>
    %10 = arith.truncf %6 : vector<16x64xf32> to vector<16x64xbf16>
    %c0_7 = arith.constant 0 : index
    %c0_8 = arith.constant 0 : index
    %c0_9 = arith.constant 0 : index
    %11 = vector.load %arg1[%c0_7, %c0_8, %c0_9] : memref<2x64x448xbf16, #tpu.memory_space<vmem>>, vector<1x64x192xbf16>
    %12 = vector.shape_cast %11 : vector<1x64x192xbf16> to vector<64x192xbf16>
    %cst = arith.constant dense<0.000000e+00> : vector<16x192xf32>
    %13 = tpu.matmul %10, %12, %cst {dimension_numbers = #tpu.dot_dimension_numbers<[1], [0], [0], [1], [0, 0, 1, 1], [], []>} : vector<16x64xbf16>, vector<64x192xbf16>, vector<16x192xf32> -> vector<16x192xf32>
    %14 = vector.extract_strided_slice %13 {offsets = [0, 0], sizes = [16, 64], strides = [1, 1]} : vector<16x192xf32> to vector<16x64xf32>
    %c19 = arith.constant 19 : index
    %c0_10 = arith.constant 0 : index
    %15 = vector.load %arg3[%c19, %c0_10] : memref<40x128xf32, #tpu.memory_space<vmem>>, vector<1x64xf32>
    %16 = vector.broadcast %15 : vector<1x64xf32> to vector<16x64xf32>
    %17 = arith.addf %14, %16 : vector<16x64xf32>
    %18 = vector.extract_strided_slice %13 {offsets = [0, 64], sizes = [16, 64], strides = [1, 1]} : vector<16x192xf32> to vector<16x64xf32>
    %c20 = arith.constant 20 : index
    %c0_11 = arith.constant 0 : index
    %19 = vector.load %arg3[%c20, %c0_11] : memref<40x128xf32, #tpu.memory_space<vmem>>, vector<1x64xf32>
    %20 = vector.broadcast %19 : vector<1x64xf32> to vector<16x64xf32>
    %21 = arith.addf %18, %20 : vector<16x64xf32>
    %22 = vector.extract_strided_slice %13 {offsets = [0, 128], sizes = [16, 64], strides = [1, 1]} : vector<16x192xf32> to vector<16x64xf32>
    %c21 = arith.constant 21 : index
    %c0_12 = arith.constant 0 : index
    %23 = vector.load %arg3[%c21, %c0_12] : memref<40x128xf32, #tpu.memory_space<vmem>>, vector<1x64xf32>
    %24 = vector.broadcast %23 : vector<1x64xf32> to vector<16x64xf32>
    %25 = arith.addf %22, %24 : vector<16x64xf32>
    %26 = vector.shape_cast %17 : vector<16x64xf32> to vector<1x16x64xf32>
    %27 = vector.broadcast %26 : vector<1x16x64xf32> to vector<8x16x64xf32>
    %28 = arith.mulf %27, %8 : vector<8x16x64xf32>
    %29 = vector.shape_cast %28 : vector<8x16x64xf32> to vector<128x64xf32>
    %30 = arith.truncf %29 : vector<128x64xf32> to vector<128x64xbf16>
    %31 = tpu.transpose %21, [1, 0] : vector<16x64xf32> -> vector<64x16xf32>
    %32 = arith.truncf %31 : vector<64x16xf32> to vector<64x16xbf16>
    %cst_13 = arith.constant dense<0.000000e+00> : vector<128x16xf32>
    %33 = tpu.matmul %30, %32, %cst_13 {dimension_numbers = #tpu.dot_dimension_numbers<[1], [0], [0], [1], [0, 0, 1, 1], [], []>} : vector<128x64xbf16>, vector<64x16xbf16>, vector<128x16xf32> -> vector<128x16xf32>
    %34 = arith.addf %33, %9 : vector<128x16xf32>
    %cst_14 = arith.constant dense<0xFF800000> : vector<128xf32>
    %35 = vector.multi_reduction <maximumf>, %34, %cst_14 [1] : vector<128x16xf32> to vector<128xf32>
    %36 = vector.shape_cast %35 : vector<128xf32> to vector<128x1xf32>
    %37 = vector.broadcast %36 : vector<128x1xf32> to vector<128x16xf32>
    %38 = arith.subf %34, %37 : vector<128x16xf32>
    %39 = math.exp %38 : vector<128x16xf32>
    %cst_15 = arith.constant dense<0.000000e+00> : vector<128xf32>
    %40 = vector.multi_reduction <add>, %39, %cst_15 [1] : vector<128x16xf32> to vector<128xf32>
    %41 = vector.shape_cast %40 : vector<128xf32> to vector<128x1xf32>
    %42 = tpu.reciprocal %41 {approx = true} : vector<128x1xf32> -> vector<128x1xf32>
    %43 = vector.broadcast %42 : vector<128x1xf32> to vector<128x16xf32>
    %44 = arith.mulf %39, %43 : vector<128x16xf32>
    %45 = arith.truncf %44 : vector<128x16xf32> to vector<128x16xbf16>
    %46 = arith.truncf %25 : vector<16x64xf32> to vector<16x64xbf16>
    %cst_16 = arith.constant dense<0.000000e+00> : vector<128x64xf32>
    %47 = tpu.matmul %45, %46, %cst_16 {dimension_numbers = #tpu.dot_dimension_numbers<[1], [0], [0], [1], [0, 0, 1, 1], [], []>} : vector<128x16xbf16>, vector<16x64xbf16>, vector<128x64xf32> -> vector<128x64xf32>
    %48 = vector.shape_cast %47 : vector<128x64xf32> to vector<8x16x64xf32>
    %49 = arith.mulf %48, %8 : vector<8x16x64xf32>
    %cst_17 = arith.constant dense<0.000000e+00> : vector<16x64xf32>
    %50 = vector.multi_reduction <add>, %49, %cst_17 [0] : vector<8x16x64xf32> to vector<16x64xf32>
    %51 = arith.truncf %50 : vector<16x64xf32> to vector<16x64xbf16>
    %c0_18 = arith.constant 0 : index
    %c0_19 = arith.constant 0 : index
    %c384 = arith.constant 384 : index
    %52 = vector.load %arg1[%c0_18, %c0_19, %c384] : memref<2x64x448xbf16, #tpu.memory_space<vmem>>, vector<1x64x64xbf16>
    %53 = vector.shape_cast %52 : vector<1x64x64xbf16> to vector<64x64xbf16>
    %cst_20 = arith.constant dense<0.000000e+00> : vector<16x64xf32>
    %54 = tpu.matmul %51, %53, %cst_20 {dimension_numbers = #tpu.dot_dimension_numbers<[1], [0], [0], [1], [0, 0, 1, 1], [], []>} : vector<16x64xbf16>, vector<64x64xbf16>, vector<16x64xf32> -> vector<16x64xf32>
    %c22 = arith.constant 22 : index
    %c0_21 = arith.constant 0 : index
    %55 = vector.load %arg3[%c22, %c0_21] : memref<40x128xf32, #tpu.memory_space<vmem>>, vector<1x64xf32>
    %56 = vector.broadcast %55 : vector<1x64xf32> to vector<16x64xf32>
    %57 = arith.addf %54, %56 : vector<16x64xf32>
    %58 = arith.addf %6, %57 : vector<16x64xf32>
    %c25 = arith.constant 25 : index
    %c0_22 = arith.constant 0 : index
    %59 = vector.load %arg3[%c25, %c0_22] : memref<40x128xf32, #tpu.memory_space<vmem>>, vector<1x64xf32>
    %c26 = arith.constant 26 : index
    %c0_23 = arith.constant 0 : index
    %60 = vector.load %arg3[%c26, %c0_23] : memref<40x128xf32, #tpu.memory_space<vmem>>, vector<1x64xf32>
    %cst_24 = arith.constant dense<0.000000e+00> : vector<16xf32>
    %61 = vector.multi_reduction <add>, %58, %cst_24 [1] : vector<16x64xf32> to vector<16xf32>
    %62 = vector.shape_cast %61 : vector<16xf32> to vector<16x1xf32>
    %cst_25 = arith.constant 6.400000e+01 : f32
    %63 = vector.broadcast %cst_25 : f32 to vector<16x1xf32>
    %64 = arith.divf %62, %63 : vector<16x1xf32>
    %65 = vector.broadcast %64 : vector<16x1xf32> to vector<16x64xf32>
    %66 = arith.subf %58, %65 : vector<16x64xf32>
    %67 = arith.mulf %66, %66 : vector<16x64xf32>
    %cst_26 = arith.constant dense<0.000000e+00> : vector<16xf32>
    %68 = vector.multi_reduction <add>, %67, %cst_26 [1] : vector<16x64xf32> to vector<16xf32>
    %69 = vector.shape_cast %68 : vector<16xf32> to vector<16x1xf32>
    %cst_27 = arith.constant 6.400000e+01 : f32
    %70 = vector.broadcast %cst_27 : f32 to vector<16x1xf32>
    %71 = arith.divf %69, %70 : vector<16x1xf32>
    %72 = vector.broadcast %64 : vector<16x1xf32> to vector<16x64xf32>
    %73 = arith.subf %58, %72 : vector<16x64xf32>
    %cst_28 = arith.constant 9.99999974E-6 : f32
    %74 = vector.broadcast %cst_28 : f32 to vector<16x1xf32>
    %75 = arith.addf %71, %74 : vector<16x1xf32>
    %76 = math.rsqrt %75 : vector<16x1xf32>
    %77 = vector.broadcast %76 : vector<16x1xf32> to vector<16x64xf32>
    %78 = arith.mulf %73, %77 : vector<16x64xf32>
    %79 = vector.broadcast %59 : vector<1x64xf32> to vector<16x64xf32>
    %80 = arith.mulf %78, %79 : vector<16x64xf32>
    %81 = vector.broadcast %60 : vector<1x64xf32> to vector<16x64xf32>
    %82 = arith.addf %80, %81 : vector<16x64xf32>
    %83 = arith.truncf %82 : vector<16x64xf32> to vector<16x64xbf16>
    %c0_29 = arith.constant 0 : index
    %c0_30 = arith.constant 0 : index
    %c256 = arith.constant 256 : index
    %84 = vector.load %arg1[%c0_29, %c0_30, %c256] : memref<2x64x448xbf16, #tpu.memory_space<vmem>>, vector<1x64x128xbf16>
    %85 = vector.shape_cast %84 : vector<1x64x128xbf16> to vector<64x128xbf16>
    %cst_31 = arith.constant dense<0.000000e+00> : vector<16x128xf32>
    %86 = tpu.matmul %83, %85, %cst_31 {dimension_numbers = #tpu.dot_dimension_numbers<[1], [0], [0], [1], [0, 0, 1, 1], [], []>} : vector<16x64xbf16>, vector<64x128xbf16>, vector<16x128xf32> -> vector<16x128xf32>
    %c23 = arith.constant 23 : index
    %c0_32 = arith.constant 0 : index
    %87 = vector.load %arg3[%c23, %c0_32] : memref<40x128xf32, #tpu.memory_space<vmem>>, vector<1x128xf32>
    %88 = vector.broadcast %87 : vector<1x128xf32> to vector<16x128xf32>
    %89 = arith.addf %86, %88 : vector<16x128xf32>
    %cst_33 = arith.constant 0.000000e+00 : f32
    %90 = vector.broadcast %cst_33 : f32 to vector<16x128xf32>
    %91 = arith.maximumf %89, %90 : vector<16x128xf32>
    %92 = arith.truncf %91 : vector<16x128xf32> to vector<16x128xbf16>
    %c0_34 = arith.constant 0 : index
    %c0_35 = arith.constant 0 : index
    %c0_36 = arith.constant 0 : index
    %93 = vector.load %arg2[%c0_34, %c0_35, %c0_36] : memref<2x128x64xbf16, #tpu.memory_space<vmem>>, vector<1x128x64xbf16>
    %94 = vector.shape_cast %93 : vector<1x128x64xbf16> to vector<128x64xbf16>
    %cst_37 = arith.constant dense<0.000000e+00> : vector<16x64xf32>
    %95 = tpu.matmul %92, %94, %cst_37 {dimension_numbers = #tpu.dot_dimension_numbers<[1], [0], [0], [1], [0, 0, 1, 1], [], []>} : vector<16x128xbf16>, vector<128x64xbf16>, vector<16x64xf32> -> vector<16x64xf32>
    %c24 = arith.constant 24 : index
    %c0_38 = arith.constant 0 : index
    %96 = vector.load %arg3[%c24, %c0_38] : memref<40x128xf32, #tpu.memory_space<vmem>>, vector<1x64xf32>
    %97 = vector.broadcast %96 : vector<1x64xf32> to vector<16x64xf32>
    %98 = arith.addf %95, %97 : vector<16x64xf32>
    %99 = arith.addf %82, %98 : vector<16x64xf32>
    %c27 = arith.constant 27 : index
    %c0_39 = arith.constant 0 : index
    %100 = vector.load %arg3[%c27, %c0_39] : memref<40x128xf32, #tpu.memory_space<vmem>>, vector<1x64xf32>
    %c28 = arith.constant 28 : index
    %c0_40 = arith.constant 0 : index
    %101 = vector.load %arg3[%c28, %c0_40] : memref<40x128xf32, #tpu.memory_space<vmem>>, vector<1x64xf32>
    %cst_41 = arith.constant dense<0.000000e+00> : vector<16xf32>
    %102 = vector.multi_reduction <add>, %99, %cst_41 [1] : vector<16x64xf32> to vector<16xf32>
    %103 = vector.shape_cast %102 : vector<16xf32> to vector<16x1xf32>
    %cst_42 = arith.constant 6.400000e+01 : f32
    %104 = vector.broadcast %cst_42 : f32 to vector<16x1xf32>
    %105 = arith.divf %103, %104 : vector<16x1xf32>
    %106 = vector.broadcast %105 : vector<16x1xf32> to vector<16x64xf32>
    %107 = arith.subf %99, %106 : vector<16x64xf32>
    %108 = arith.mulf %107, %107 : vector<16x64xf32>
    %cst_43 = arith.constant dense<0.000000e+00> : vector<16xf32>
    %109 = vector.multi_reduction <add>, %108, %cst_43 [1] : vector<16x64xf32> to vector<16xf32>
    %110 = vector.shape_cast %109 : vector<16xf32> to vector<16x1xf32>
    %cst_44 = arith.constant 6.400000e+01 : f32
    %111 = vector.broadcast %cst_44 : f32 to vector<16x1xf32>
    %112 = arith.divf %110, %111 : vector<16x1xf32>
    %113 = vector.broadcast %105 : vector<16x1xf32> to vector<16x64xf32>
    %114 = arith.subf %99, %113 : vector<16x64xf32>
    %cst_45 = arith.constant 9.99999974E-6 : f32
    %115 = vector.broadcast %cst_45 : f32 to vector<16x1xf32>
    %116 = arith.addf %112, %115 : vector<16x1xf32>
    %117 = math.rsqrt %116 : vector<16x1xf32>
    %118 = vector.broadcast %117 : vector<16x1xf32> to vector<16x64xf32>
    %119 = arith.mulf %114, %118 : vector<16x64xf32>
    %120 = vector.broadcast %100 : vector<1x64xf32> to vector<16x64xf32>
    %121 = arith.mulf %119, %120 : vector<16x64xf32>
    %122 = vector.broadcast %101 : vector<1x64xf32> to vector<16x64xf32>
    %123 = arith.addf %121, %122 : vector<16x64xf32>
    %124 = arith.truncf %123 : vector<16x64xf32> to vector<16x64xbf16>
    %c1 = arith.constant 1 : index
    %c0_46 = arith.constant 0 : index
    %c0_47 = arith.constant 0 : index
    %125 = vector.load %arg1[%c1, %c0_46, %c0_47] : memref<2x64x448xbf16, #tpu.memory_space<vmem>>, vector<1x64x192xbf16>
    %126 = vector.shape_cast %125 : vector<1x64x192xbf16> to vector<64x192xbf16>
    %cst_48 = arith.constant dense<0.000000e+00> : vector<16x192xf32>
    %127 = tpu.matmul %124, %126, %cst_48 {dimension_numbers = #tpu.dot_dimension_numbers<[1], [0], [0], [1], [0, 0, 1, 1], [], []>} : vector<16x64xbf16>, vector<64x192xbf16>, vector<16x192xf32> -> vector<16x192xf32>
    %128 = vector.extract_strided_slice %127 {offsets = [0, 0], sizes = [16, 64], strides = [1, 1]} : vector<16x192xf32> to vector<16x64xf32>
    %c29 = arith.constant 29 : index
    %c0_49 = arith.constant 0 : index
    %129 = vector.load %arg3[%c29, %c0_49] : memref<40x128xf32, #tpu.memory_space<vmem>>, vector<1x64xf32>
    %130 = vector.broadcast %129 : vector<1x64xf32> to vector<16x64xf32>
    %131 = arith.addf %128, %130 : vector<16x64xf32>
    %132 = vector.extract_strided_slice %127 {offsets = [0, 64], sizes = [16, 64], strides = [1, 1]} : vector<16x192xf32> to vector<16x64xf32>
    %c30 = arith.constant 30 : index
    %c0_50 = arith.constant 0 : index
    %133 = vector.load %arg3[%c30, %c0_50] : memref<40x128xf32, #tpu.memory_space<vmem>>, vector<1x64xf32>
    %134 = vector.broadcast %133 : vector<1x64xf32> to vector<16x64xf32>
    %135 = arith.addf %132, %134 : vector<16x64xf32>
    %136 = vector.extract_strided_slice %127 {offsets = [0, 128], sizes = [16, 64], strides = [1, 1]} : vector<16x192xf32> to vector<16x64xf32>
    %c31 = arith.constant 31 : index
    %c0_51 = arith.constant 0 : index
    %137 = vector.load %arg3[%c31, %c0_51] : memref<40x128xf32, #tpu.memory_space<vmem>>, vector<1x64xf32>
    %138 = vector.broadcast %137 : vector<1x64xf32> to vector<16x64xf32>
    %139 = arith.addf %136, %138 : vector<16x64xf32>
    %140 = vector.shape_cast %131 : vector<16x64xf32> to vector<1x16x64xf32>
    %141 = vector.broadcast %140 : vector<1x16x64xf32> to vector<8x16x64xf32>
    %142 = arith.mulf %141, %8 : vector<8x16x64xf32>
    %143 = vector.shape_cast %142 : vector<8x16x64xf32> to vector<128x64xf32>
    %144 = arith.truncf %143 : vector<128x64xf32> to vector<128x64xbf16>
    %145 = tpu.transpose %135, [1, 0] : vector<16x64xf32> -> vector<64x16xf32>
    %146 = arith.truncf %145 : vector<64x16xf32> to vector<64x16xbf16>
    %cst_52 = arith.constant dense<0.000000e+00> : vector<128x16xf32>
    %147 = tpu.matmul %144, %146, %cst_52 {dimension_numbers = #tpu.dot_dimension_numbers<[1], [0], [0], [1], [0, 0, 1, 1], [], []>} : vector<128x64xbf16>, vector<64x16xbf16>, vector<128x16xf32> -> vector<128x16xf32>
    %148 = arith.addf %147, %9 : vector<128x16xf32>
    %cst_53 = arith.constant dense<0xFF800000> : vector<128xf32>
    %149 = vector.multi_reduction <maximumf>, %148, %cst_53 [1] : vector<128x16xf32> to vector<128xf32>
    %150 = vector.shape_cast %149 : vector<128xf32> to vector<128x1xf32>
    %151 = vector.broadcast %150 : vector<128x1xf32> to vector<128x16xf32>
    %152 = arith.subf %148, %151 : vector<128x16xf32>
    %153 = math.exp %152 : vector<128x16xf32>
    %cst_54 = arith.constant dense<0.000000e+00> : vector<128xf32>
    %154 = vector.multi_reduction <add>, %153, %cst_54 [1] : vector<128x16xf32> to vector<128xf32>
    %155 = vector.shape_cast %154 : vector<128xf32> to vector<128x1xf32>
    %156 = tpu.reciprocal %155 {approx = true} : vector<128x1xf32> -> vector<128x1xf32>
    %157 = vector.broadcast %156 : vector<128x1xf32> to vector<128x16xf32>
    %158 = arith.mulf %153, %157 : vector<128x16xf32>
    %159 = arith.truncf %158 : vector<128x16xf32> to vector<128x16xbf16>
    %160 = arith.truncf %139 : vector<16x64xf32> to vector<16x64xbf16>
    %cst_55 = arith.constant dense<0.000000e+00> : vector<128x64xf32>
    %161 = tpu.matmul %159, %160, %cst_55 {dimension_numbers = #tpu.dot_dimension_numbers<[1], [0], [0], [1], [0, 0, 1, 1], [], []>} : vector<128x16xbf16>, vector<16x64xbf16>, vector<128x64xf32> -> vector<128x64xf32>
    %162 = vector.shape_cast %161 : vector<128x64xf32> to vector<8x16x64xf32>
    %163 = arith.mulf %162, %8 : vector<8x16x64xf32>
    %cst_56 = arith.constant dense<0.000000e+00> : vector<16x64xf32>
    %164 = vector.multi_reduction <add>, %163, %cst_56 [0] : vector<8x16x64xf32> to vector<16x64xf32>
    %165 = arith.truncf %164 : vector<16x64xf32> to vector<16x64xbf16>
    %c1_57 = arith.constant 1 : index
    %c0_58 = arith.constant 0 : index
    %c384_59 = arith.constant 384 : index
    %166 = vector.load %arg1[%c1_57, %c0_58, %c384_59] : memref<2x64x448xbf16, #tpu.memory_space<vmem>>, vector<1x64x64xbf16>
    %167 = vector.shape_cast %166 : vector<1x64x64xbf16> to vector<64x64xbf16>
    %cst_60 = arith.constant dense<0.000000e+00> : vector<16x64xf32>
    %168 = tpu.matmul %165, %167, %cst_60 {dimension_numbers = #tpu.dot_dimension_numbers<[1], [0], [0], [1], [0, 0, 1, 1], [], []>} : vector<16x64xbf16>, vector<64x64xbf16>, vector<16x64xf32> -> vector<16x64xf32>
    %c32 = arith.constant 32 : index
    %c0_61 = arith.constant 0 : index
    %169 = vector.load %arg3[%c32, %c0_61] : memref<40x128xf32, #tpu.memory_space<vmem>>, vector<1x64xf32>
    %170 = vector.broadcast %169 : vector<1x64xf32> to vector<16x64xf32>
    %171 = arith.addf %168, %170 : vector<16x64xf32>
    %172 = arith.addf %123, %171 : vector<16x64xf32>
    %c35 = arith.constant 35 : index
    %c0_62 = arith.constant 0 : index
    %173 = vector.load %arg3[%c35, %c0_62] : memref<40x128xf32, #tpu.memory_space<vmem>>, vector<1x64xf32>
    %c36 = arith.constant 36 : index
    %c0_63 = arith.constant 0 : index
    %174 = vector.load %arg3[%c36, %c0_63] : memref<40x128xf32, #tpu.memory_space<vmem>>, vector<1x64xf32>
    %cst_64 = arith.constant dense<0.000000e+00> : vector<16xf32>
    %175 = vector.multi_reduction <add>, %172, %cst_64 [1] : vector<16x64xf32> to vector<16xf32>
    %176 = vector.shape_cast %175 : vector<16xf32> to vector<16x1xf32>
    %cst_65 = arith.constant 6.400000e+01 : f32
    %177 = vector.broadcast %cst_65 : f32 to vector<16x1xf32>
    %178 = arith.divf %176, %177 : vector<16x1xf32>
    %179 = vector.broadcast %178 : vector<16x1xf32> to vector<16x64xf32>
    %180 = arith.subf %172, %179 : vector<16x64xf32>
    %181 = arith.mulf %180, %180 : vector<16x64xf32>
    %cst_66 = arith.constant dense<0.000000e+00> : vector<16xf32>
    %182 = vector.multi_reduction <add>, %181, %cst_66 [1] : vector<16x64xf32> to vector<16xf32>
    %183 = vector.shape_cast %182 : vector<16xf32> to vector<16x1xf32>
    %cst_67 = arith.constant 6.400000e+01 : f32
    %184 = vector.broadcast %cst_67 : f32 to vector<16x1xf32>
    %185 = arith.divf %183, %184 : vector<16x1xf32>
    %186 = vector.broadcast %178 : vector<16x1xf32> to vector<16x64xf32>
    %187 = arith.subf %172, %186 : vector<16x64xf32>
    %cst_68 = arith.constant 9.99999974E-6 : f32
    %188 = vector.broadcast %cst_68 : f32 to vector<16x1xf32>
    %189 = arith.addf %185, %188 : vector<16x1xf32>
    %190 = math.rsqrt %189 : vector<16x1xf32>
    %191 = vector.broadcast %190 : vector<16x1xf32> to vector<16x64xf32>
    %192 = arith.mulf %187, %191 : vector<16x64xf32>
    %193 = vector.broadcast %173 : vector<1x64xf32> to vector<16x64xf32>
    %194 = arith.mulf %192, %193 : vector<16x64xf32>
    %195 = vector.broadcast %174 : vector<1x64xf32> to vector<16x64xf32>
    %196 = arith.addf %194, %195 : vector<16x64xf32>
    %197 = arith.truncf %196 : vector<16x64xf32> to vector<16x64xbf16>
    %c1_69 = arith.constant 1 : index
    %c0_70 = arith.constant 0 : index
    %c256_71 = arith.constant 256 : index
    %198 = vector.load %arg1[%c1_69, %c0_70, %c256_71] : memref<2x64x448xbf16, #tpu.memory_space<vmem>>, vector<1x64x128xbf16>
    %199 = vector.shape_cast %198 : vector<1x64x128xbf16> to vector<64x128xbf16>
    %cst_72 = arith.constant dense<0.000000e+00> : vector<16x128xf32>
    %200 = tpu.matmul %197, %199, %cst_72 {dimension_numbers = #tpu.dot_dimension_numbers<[1], [0], [0], [1], [0, 0, 1, 1], [], []>} : vector<16x64xbf16>, vector<64x128xbf16>, vector<16x128xf32> -> vector<16x128xf32>
    %c33 = arith.constant 33 : index
    %c0_73 = arith.constant 0 : index
    %201 = vector.load %arg3[%c33, %c0_73] : memref<40x128xf32, #tpu.memory_space<vmem>>, vector<1x128xf32>
    %202 = vector.broadcast %201 : vector<1x128xf32> to vector<16x128xf32>
    %203 = arith.addf %200, %202 : vector<16x128xf32>
    %cst_74 = arith.constant 0.000000e+00 : f32
    %204 = vector.broadcast %cst_74 : f32 to vector<16x128xf32>
    %205 = arith.maximumf %203, %204 : vector<16x128xf32>
    %206 = arith.truncf %205 : vector<16x128xf32> to vector<16x128xbf16>
    %c1_75 = arith.constant 1 : index
    %c0_76 = arith.constant 0 : index
    %c0_77 = arith.constant 0 : index
    %207 = vector.load %arg2[%c1_75, %c0_76, %c0_77] : memref<2x128x64xbf16, #tpu.memory_space<vmem>>, vector<1x128x64xbf16>
    %208 = vector.shape_cast %207 : vector<1x128x64xbf16> to vector<128x64xbf16>
    %cst_78 = arith.constant dense<0.000000e+00> : vector<16x64xf32>
    %209 = tpu.matmul %206, %208, %cst_78 {dimension_numbers = #tpu.dot_dimension_numbers<[1], [0], [0], [1], [0, 0, 1, 1], [], []>} : vector<16x128xbf16>, vector<128x64xbf16>, vector<16x64xf32> -> vector<16x64xf32>
    %c34 = arith.constant 34 : index
    %c0_79 = arith.constant 0 : index
    %210 = vector.load %arg3[%c34, %c0_79] : memref<40x128xf32, #tpu.memory_space<vmem>>, vector<1x64xf32>
    %211 = vector.broadcast %210 : vector<1x64xf32> to vector<16x64xf32>
    %212 = arith.addf %209, %211 : vector<16x64xf32>
    %213 = arith.addf %196, %212 : vector<16x64xf32>
    %c37 = arith.constant 37 : index
    %c0_80 = arith.constant 0 : index
    %214 = vector.load %arg3[%c37, %c0_80] : memref<40x128xf32, #tpu.memory_space<vmem>>, vector<1x64xf32>
    %c38 = arith.constant 38 : index
    %c0_81 = arith.constant 0 : index
    %215 = vector.load %arg3[%c38, %c0_81] : memref<40x128xf32, #tpu.memory_space<vmem>>, vector<1x64xf32>
    %cst_82 = arith.constant dense<0.000000e+00> : vector<16xf32>
    %216 = vector.multi_reduction <add>, %213, %cst_82 [1] : vector<16x64xf32> to vector<16xf32>
    %217 = vector.shape_cast %216 : vector<16xf32> to vector<16x1xf32>
    %cst_83 = arith.constant 6.400000e+01 : f32
    %218 = vector.broadcast %cst_83 : f32 to vector<16x1xf32>
    %219 = arith.divf %217, %218 : vector<16x1xf32>
    %220 = vector.broadcast %219 : vector<16x1xf32> to vector<16x64xf32>
    %221 = arith.subf %213, %220 : vector<16x64xf32>
    %222 = arith.mulf %221, %221 : vector<16x64xf32>
    %cst_84 = arith.constant dense<0.000000e+00> : vector<16xf32>
    %223 = vector.multi_reduction <add>, %222, %cst_84 [1] : vector<16x64xf32> to vector<16xf32>
    %224 = vector.shape_cast %223 : vector<16xf32> to vector<16x1xf32>
    %cst_85 = arith.constant 6.400000e+01 : f32
    %225 = vector.broadcast %cst_85 : f32 to vector<16x1xf32>
    %226 = arith.divf %224, %225 : vector<16x1xf32>
    %227 = vector.broadcast %219 : vector<16x1xf32> to vector<16x64xf32>
    %228 = arith.subf %213, %227 : vector<16x64xf32>
    %cst_86 = arith.constant 9.99999974E-6 : f32
    %229 = vector.broadcast %cst_86 : f32 to vector<16x1xf32>
    %230 = arith.addf %226, %229 : vector<16x1xf32>
    %231 = math.rsqrt %230 : vector<16x1xf32>
    %232 = vector.broadcast %231 : vector<16x1xf32> to vector<16x64xf32>
    %233 = arith.mulf %228, %232 : vector<16x64xf32>
    %234 = vector.broadcast %214 : vector<1x64xf32> to vector<16x64xf32>
    %235 = arith.mulf %233, %234 : vector<16x64xf32>
    %236 = vector.broadcast %215 : vector<1x64xf32> to vector<16x64xf32>
    %237 = arith.addf %235, %236 : vector<16x64xf32>
    %238 = vector.extract_strided_slice %237 {offsets = [14, 0], sizes = [2, 64], strides = [1, 1]} : vector<16x64xf32> to vector<2x64xf32>
    %c17 = arith.constant 17 : index
    %c0_87 = arith.constant 0 : index
    %239 = vector.load %arg3[%c17, %c0_87] : memref<40x128xf32, #tpu.memory_space<vmem>>, vector<1x64xf32>
    %c18 = arith.constant 18 : index
    %c0_88 = arith.constant 0 : index
    %240 = vector.load %arg3[%c18, %c0_88] : memref<40x128xf32, #tpu.memory_space<vmem>>, vector<1x1xf32>
    %241 = vector.broadcast %239 : vector<1x64xf32> to vector<2x64xf32>
    %242 = arith.mulf %238, %241 : vector<2x64xf32>
    %cst_89 = arith.constant dense<0.000000e+00> : vector<2xf32>
    %243 = vector.multi_reduction <add>, %242, %cst_89 [1] : vector<2x64xf32> to vector<2xf32>
    %244 = vector.shape_cast %243 : vector<2xf32> to vector<2x1xf32>
    %245 = vector.broadcast %240 : vector<1x1xf32> to vector<2x1xf32>
    %246 = arith.addf %244, %245 : vector<2x1xf32>
    %c0_90 = arith.constant 0 : index
    %c0_91 = arith.constant 0 : index
    %247 = vector.load %arg5[%c0_90, %c0_91] : memref<2x1xf32, #tpu.memory_space<vmem>>, vector<2x1xf32>
    tpu.vector_store %arg5[%c0_90, %c0_91], %246 {strides = array<i32>} : memref<2x1xf32, #tpu.memory_space<vmem>>, vector<2x1xf32>,
    return
  }
}

</mosaic_0001>

<bundles_post_ra>
// kernel: transformer_forward.1
= control target key start
LH: loop header
LB: loop body
LE: loop exit
PB: predicated region body
PF: predicated region fallthrough
CT: control target
= control target key end

     0   :  { %v2302_v0 = vmov 0   ;;  %s2303_s26 = smov 64   ;;  %vm106_vm0 = vcmask 523264   ;;  %vm359_vm1 = vcmask 130048   ;;  %s3423_s0 = inlined_call_operand.vmem [shape: f32[16,1], index: 0, kind: input, shape index: {}]   ;;  %s3424_s1 = inlined_call_operand.vmem [shape: bf16[2,64,448], index: 1, kind: input, shape index: {}]   ;;  %s3425_s3 = inlined_call_operand.vmem [shape: f32[40,128], index: 3, kind: input, shape index: {}]   ;;  %s3426_s4 = inlined_call_operand.vmem [shape: f32[128,80], index: 4, kind: input, shape index: {}]   ;;  %s3427_s2 = inlined_call_operand.vmem [shape: bf16[2,128,64], index: 2, kind: input, shape index: {}]   ;;  %s3428_s5 = inlined_call_operand.vmem [shape: f32[2,1], index: 5, kind: output, shape index: {}]  }
   0x1   :  { %2118 = vset.pattern.permute.xlu0 %v2302_v0  ;;  %v24_v1 = vld [vmem:[%s3423_s0] sm:$0xff]  ;;  %v2073_v3 = vld [vmem:[%s3424_s1 + $0x6c] sm:$0xf0]  ;;  %v25_v5 = vld [vmem:[%s3423_s0 + $0x8] sm:$0xff] }
   0x2   :  { %v1820_v2 = vld [vmem:[%s3424_s1 + $0x60] sm:$0xf]  ;;  %28 = vperm.xlu0 %2118, %v24_v1   ;;  %v2071_v7 = vld [vmem:[%s3424_s1 + $0x4c] sm:$0xf0]  ;;  %v2072_v15 = vld [vmem:[%s3424_s1 + $0x64] sm:$0xf] }
   0x3   :  { %v1821_v4 = vor.u32 %v2073_v3, %v1820_v2  ;;  %v1812_v6 = vld [vmem:[%s3424_s1 + $0x40] sm:$0xf]  ;;  %v2069_v10 = vld [vmem:[%s3424_s1 + $0x2c] sm:$0xf0]  ;;  %v1822_v16 = vld [vmem:[%s3424_s1 + $0x70] sm:$0xf0] }
   0x4   :  { %v1813_v8 = vor.u32 %v2071_v7, %v1812_v6  ;;  %v1804_v9 = vld [vmem:[%s3424_s1 + $0x20] sm:$0xf]  ;;  %v2067_v13 = vld [vmem:[%s3424_s1 + $0xc] sm:$0xf0]  ;;  %v1825_v17 = vor.u32 %v2072_v15, %v1822_v16  ;;  %v2070_v18 = vld [vmem:[%s3424_s1 + $0x44] sm:$0xf] }
   0x5   :  { %114 = vmatpush.bf16.msra.mxu0 %v1821_v4  ;;  %v1805_v11 = vor.u32 %v2069_v10, %v1804_v9  ;;  %v1796_v12 = vld [vmem:[%s3424_s1] sm:$0xf]  ;;  %v1814_v19 = vld [vmem:[%s3424_s1 + $0x50] sm:$0xf0]  ;;  %v2068_v22 = vld [vmem:[%s3424_s1 + $0x24] sm:$0xf] }
   0x6   :  { %v1797_v14 = vor.u32 %v2067_v13, %v1796_v12  ;;  %v1817_v20 = vor.u32 %v2070_v18, %v1814_v19  ;;  %v2120_v21 = vld [vmem:[%s3425_s3 + $0x14] ss:$0 sm:$0xff]  ;;  %v2066_v25 = vld [vmem:[%s3424_s1 + $0x4] sm:$0xf]  ;;  %v2119_v29 = vld [vmem:[%s3425_s3 + $0x10] ss:$0 sm:$0xff] }
   0x7   :  { %v1806_v23 = vld [vmem:[%s3424_s1 + $0x30] sm:$0xf0]  ;;  %145 = vrot.lane.b32.xlu1 %v2120_v21, %s2303_s26  ;;  %v22_v31 = vld [vmem:[%s3425_s3] sm:$0xff]  ;;  %v23_v32 = vld [vmem:[%s3425_s3 + $0x8] sm:$0xff] }
   0x8   :  { %v1809_v24 = vor.u32 %v2068_v22, %v1806_v23  ;;  %v1798_v26 = vld [vmem:[%s3424_s1 + $0x10] sm:$0xf0]  ;;  %v2413_v38 = vld [vmem:[%s3426_s4] sm:$0xff]  ;;  %v2434_v41 = vld [vmem:[%s3426_s4 + $0x38] sm:$0xff] }
   0x9   :  { %115 = vmatpush.bf16.msra.mxu0 %v1813_v8  ;;  %v1801_v27 = vor.u32 %v2066_v25, %v1798_v26  ;;  %v2420_v39 = vld [vmem:[%s3426_s4 + $0x10] sm:$0xff]  ;;  %v2427_v40 = vld [vmem:[%s3426_s4 + $0x20] sm:$0xff]  ;;  %v2445_v46 = vld [vmem:[%s3426_s4 + $0x48] sm:$0xff] }
   0xa   :  { %33 = vperm.xlu0 %2118, %v25_v5   ;;  %v2121_v44 = vld [vmem:[%s3425_s3 + $0x13] ss:$0 sm:$0xff]  ;;  %v2457_v49 = vld [vmem:[%s3426_s4 + $0x40] sm:$0xff]  ;;  %v2477_v54 = vld [vmem:[%s3426_s4 + $0x8] sm:$0xff] }
   0xb   :  { %v2452_v48 = vld [vmem:[%s3426_s4 + $0x30] sm:$0xff]  ;;  %v2467_v51 = vld [vmem:[%s3426_s4 + $0x60] sm:$0xff]  ;;  %v2485_v56 = vld [vmem:[%s3426_s4 + $0x18] sm:$0xff] }
   0xc   :  { %v2462_v50 = vld [vmem:[%s3426_s4 + $0x50] sm:$0xff]  ;;  %v2493_v58 = vld [vmem:[%s3426_s4 + $0x28] sm:$0xff]  ;;  %v2504_v63 = vld [vmem:[%s3426_s4 + $0x58] sm:$0xff] }
   0xd   :  { %116 = vmatpush.bf16.msra.mxu0 %v1805_v11  ;;  %v2472_v52 = vld [vmem:[%s3426_s4 + $0x70] sm:$0xff]  ;;  %v2509_v0 = vld [vmem:[%s3426_s4 + $0x68] sm:$0xff]  ;;  %v2517_v4 = vld [vmem:[%s3426_s4 + $0x78] sm:$0xff] }
   0xe   :  { %v2122_v23 = vld [vmem:[%s3425_s3 + $0x15] ss:$0 sm:$0xff] }
  0x11   :  { %117 = vmatpush.bf16.msra.mxu0 %v1797_v14 }
  0x12   :  { %238 = vrot.lane.b32.xlu0 %v2413_v38, %s2303_s26 }
  0x15   :  { %128 = vmatpush.bf16.msrb.mxu0 %v1825_v17 }
  0x19   :  { %129 = vmatpush.bf16.msrb.mxu0 %v1817_v20 }
  0x1a   :  { %242 = vrot.lane.b32.xlu0 %v2420_v39, %s2303_s26 }
  0x1d   :  { %130 = vmatpush.bf16.msrb.mxu0 %v1809_v24 }
  0x21   :  { %131 = vmatpush.bf16.msrb.mxu0 %v1801_v27 }
  0x22   :  { %246 = vrot.lane.b32.xlu0 %v2427_v40, %s2303_s26 }
  0x2a   :  { %252 = vrot.lane.b32.xlu0 %v2434_v41, %s2303_s26 }
  0x32   :  { %256 = vrot.lane.b32.xlu0 %v2445_v46, %s2303_s26 }
  0x3a   :  { %258 = vrot.lane.b32.xlu0 %v2462_v50, %s2303_s26 }
  0x42   :  { %262 = vrot.lane.b32.xlu0 %v2467_v51, %s2303_s26 }
  0x74   :  { %v29_v28 = vpop.permute.xlu0 %28 }
  0x75   :  { %v37_v30 = vmul.f32 %v2119_v29, %v29_v28 }
  0x77   :  { %v2402_v35 = vadd.f32 %v37_v30, %v22_v31 }
  0x79   :  { %v146_v42 = vpop.permute.xlu1 %145 }
  0x7c   :  { %v34_v33 = vpop.permute.xlu0 %33 }
  0x7d   :  { %v38_v34 = vmul.f32 %v2119_v29, %v34_v33 }
  0x7f   :  { %v2404_v36 = vadd.f32 %v38_v34, %v23_v32 }
  0x81   :  { %v57_v37 = vpack.c.bf16 %v2404_v36, %v2402_v35 }
  0x83   :  { %1826 = vmatmul.msk.bf16.vlgmr.msra.gmra.mxu0 %vm106_vm0, %v57_v37 }
  0x93   :  { %1827 = vmatmul.msk.bf16.vlgmr.msrb.gmra.mxu0 %vm106_vm0, %v57_v37 }
 0x100   :  { %v119_v43 = vpop.f32.mrf.mxu0 }
 0x101   :  { %v148_v45 = vadd.f32 %v146_v42, %v119_v43  ;;  %v140_v47 = vadd.f32 %v2121_v44, %v119_v43 }
 0x103   :  { %180 = vrot.lane.b32.xlu1 %v148_v45, %s2303_s26  ;;  %v2480_v55 = vmul.f32 %v140_v47, %v2413_v38  ;;  %v2488_v57 = vmul.f32 %v140_v47, %v2420_v39  ;;  %v2496_v61 = vmul.f32 %v140_v47, %v2427_v40  ;;  %v2499_v62 = vmul.f32 %v140_v47, %v2452_v48 }
 0x104   :  { %v162_v1 = vmul.f32 %v140_v47, %v2457_v49  ;;  %v164_v2 = vmul.f32 %v140_v47, %v2462_v50  ;;  %v166_v3 = vmul.f32 %v140_v47, %v2467_v51  ;;  %v168_v5 = vmul.f32 %v140_v47, %v2472_v52 }
 0x108   :  { %v121_v53 = vpop.f32.mrf.mxu0 }
 0x109   :  { %v141_v59 = vadd.f32 %v2121_v44, %v121_v53  ;;  %v149_v60 = vadd.f32 %v146_v42, %v121_v53 }
 0x10b   :  { %182 = vrot.lane.b32.xlu2 %v149_v60, %s2303_s26  ;;  %v155_v6 = vmul.f32 %v141_v59, %v2477_v54  ;;  %v157_v7 = vmul.f32 %v141_v59, %v2485_v56  ;;  %240 = vrot.lane.b32.xlu1 %v2477_v54, %s2303_s26  ;;  %v159_v8 = vmul.f32 %v141_v59, %v2493_v58 }
 0x10c   :  { %v161_v9 = vmul.f32 %v141_v59, %v2434_v41  ;;  %v163_v10 = vmul.f32 %v141_v59, %v2445_v46  ;;  %v165_v11 = vmul.f32 %v141_v59, %v2504_v63  ;;  %v167_v12 = vmul.f32 %v141_v59, %v2509_v0 }
 0x10d   :  { %v170_v13 = vpack.c.bf16 %v155_v6, %v2480_v55  ;;  %v171_v14 = vpack.c.bf16 %v157_v7, %v2488_v57  ;;  %v172_v15 = vpack.c.bf16 %v159_v8, %v2496_v61  ;;  %v169_v16 = vmul.f32 %v141_v59, %v2517_v4  ;;  %v2560_v55 = vpop.permute.xlu0 %238 }
 0x10e   :  { %v173_v17 = vpack.c.bf16 %v161_v9, %v2499_v62  ;;  %v174_v18 = vpack.c.bf16 %v163_v10, %v162_v1  ;;  %v175_v19 = vpack.c.bf16 %v165_v11, %v164_v2  ;;  %v176_v20 = vpack.c.bf16 %v167_v12, %v166_v3 }
 0x10f   :  { %v177_v21 = vpack.c.bf16 %v169_v16, %v168_v5 }
 0x110   :  { %v133_v22 = vpop.f32.mrf.mxu0 }
 0x111   :  { %v152_v25 = vadd.f32 %v2122_v23, %v133_v22 }
 0x113   :  { %244 = vrot.lane.b32.xlu1 %v2485_v56, %s2303_s26 }
 0x115   :  { %v2568_v3 = vpop.permute.xlu0 %242 }
 0x118   :  { %v135_v24 = vpop.f32.mrf.mxu0 }
 0x119   :  { %v153_v26 = vadd.f32 %v2122_v23, %v135_v24 }
 0x11b   :  { %v544_v27 = vpack.c.bf16 %v153_v26, %v152_v25  ;;  %248 = vrot.lane.b32.xlu1 %v2493_v58, %s2303_s26 }
 0x11d   :  { %576 = vmatpush.bf16.msra.mxu3 %v544_v27  ;;  %v2579_v12 = vpop.permute.xlu0 %246 }
 0x123   :  { %254 = vrot.lane.b32.xlu1 %v2457_v49, %s2303_s26 }
 0x125   :  { %v2600_v24 = vpop.permute.xlu0 %252 }
 0x12b   :  { %260 = vrot.lane.b32.xlu1 %v2504_v63, %s2303_s26 }
 0x165   :  { %v183_v29 = vpop.permute.xlu2 %182 }
 0x175   :  { %v181_v28 = vpop.permute.xlu1 %180 }
 0x176   :  { %186 = vxpose.xlu2.b32.start [1/2] (short) (narrow) %v181_v28, 64 }
 0x17d   :  { %v2564_v61 = vpop.permute.xlu1 %240 }
 0x17e   :  { %187 = vxpose.xlu2.b32.end [2/2] (short) (narrow) %v183_v29, 64 }
 0x185   :  { %v2572_v8 = vpop.permute.xlu1 %244 }
 0x18d   :  { %v2586_v16 = vpop.permute.xlu1 %248 }
 0x195   :  { %v2607_v28 = vpop.permute.xlu1 %254 }
 0x20f   :  { %v202_v30 = vpop.trf.xlu2 }
 0x217   :  { %v203_v31 = vpop.trf.xlu2  ;;  %250 = vrot.lane.b32.xlu2 %v2452_v48, %s2303_s26 }
 0x218   :  { %v218_v53 = vpack.c.bf16 %v203_v31, %v202_v30 }
 0x21f   :  { %v204_v32 = vpop.trf.xlu2 }
 0x227   :  { %v205_v33 = vpop.trf.xlu2 }
 0x228   :  { %v219_v47 = vpack.c.bf16 %v205_v33, %v204_v32  ;;  %v2614_v32 = vpop.permute.xlu0 %256 }
 0x22f   :  { %v206_v34 = vpop.trf.xlu2 }
 0x237   :  { %v207_v37 = vpop.trf.xlu2 }
 0x238   :  { %v220_v45 = vpack.c.bf16 %v207_v37, %v206_v34 }
 0x23f   :  { %v208_v42 = vpop.trf.xlu2 }
 0x247   :  { %v209_v43 = vpop.trf.xlu2 }
 0x248   :  { %v221_v44 = vpack.c.bf16 %v209_v43, %v208_v42  ;;  %v2620_v42 = vpop.permute.xlu0 %258 }
 0x24a   :  { %314 = vmatpush.bf16.msra.mxu2 %v221_v44 }
 0x24e   :  { %315 = vmatpush.bf16.msra.mxu2 %v220_v45  ;;  %v2626_v45 = vpop.permute.xlu1 %260 }
 0x250   :  { %v2624_v44 = vpop.permute.xlu0 %262 }
 0x252   :  { %316 = vmatpush.bf16.msra.mxu2 %v219_v47 }
 0x256   :  { %317 = vmatpush.bf16.msra.mxu2 %v218_v53 }
 0x259   :  { %1828 = vmatmul.msk.bf16.vlgmr.msra.gmra.mxu2 %vm106_vm0, %v170_v13 }
 0x269   :  { %1829 = vmatmul.msk.bf16.gmra.mxu2 %vm106_vm0, %v171_v14 }
 0x279   :  { %1830 = vmatmul.msk.bf16.gmra.mxu2 %vm106_vm0, %v172_v15 }
 0x289   :  { %1831 = vmatmul.msk.bf16.gmra.mxu2 %vm106_vm0, %v173_v17 }
 0x299   :  { %1832 = vmatmul.msk.bf16.gmra.mxu2 %vm106_vm0, %v174_v18 }
 0x2a9   :  { %1833 = vmatmul.msk.bf16.gmra.mxu2 %vm106_vm0, %v175_v19 }
 0x2b9   :  { %1834 = vmatmul.msk.bf16.gmra.mxu2 %vm106_vm0, %v176_v20  ;;  %v2593_v20 = vpop.permute.xlu2 %250 }
 0x2c9   :  { %1835 = vmatmul.msk.bf16.gmra.mxu2 %vm106_vm0, %v177_v21 }
 0x2dc   :  { %v319_v57 = vpop.f32.mrf.mxu2 }
 0x2dd   :  { %v320_v59 = vadd.f32 %v319_v57, %v2560_v55 }
 0x2df   :  { %v360_v60 = vsel %vm359_vm1, %v320_v59, -inf }
 0x2e0   :  { %361 = vmax.xlane.f32.xlu0 %v360_v60 }
 0x2e4   :  { %v321_v62 = vpop.f32.mrf.mxu2 }
 0x2e5   :  { %v322_v1 = vadd.f32 %v321_v62, %v2564_v61 }
 0x2e7   :  { %v363_v2 = vsel %vm359_vm1, %v322_v1, -inf }
 0x2e8   :  { %364 = vmax.xlane.f32.xlu1 %v363_v2 }
 0x2ec   :  { %v324_v5 = vpop.f32.mrf.mxu2 }
 0x2ed   :  { %v325_v6 = vadd.f32 %v324_v5, %v2568_v3 }
 0x2ef   :  { %v366_v7 = vsel %vm359_vm1, %v325_v6, -inf }
 0x2f0   :  { %367 = vmax.xlane.f32.xlu1 %v366_v7 }
 0x2f4   :  { %v326_v9 = vpop.f32.mrf.mxu2 }
 0x2f5   :  { %v2575_v10 = vadd.f32 %v326_v9, %v2572_v8 }
 0x2f7   :  { %v369_v11 = vsel %vm359_vm1, %v2575_v10, -inf }
 0x2f8   :  { %370 = vmax.xlane.f32.xlu1 %v369_v11 }
 0x2fc   :  { %v329_v13 = vpop.f32.mrf.mxu2 }
 0x2fd   :  { %v2582_v14 = vadd.f32 %v329_v13, %v2579_v12 }
 0x2ff   :  { %v372_v15 = vsel %vm359_vm1, %v2582_v14, -inf }
 0x300   :  { %373 = vmax.xlane.f32.xlu0 %v372_v15 }
 0x304   :  { %v331_v17 = vpop.f32.mrf.mxu2 }
 0x305   :  { %v2589_v18 = vadd.f32 %v331_v17, %v2586_v16 }
 0x307   :  { %v375_v19 = vsel %vm359_vm1, %v2589_v18, -inf }
 0x308   :  { %376 = vmax.xlane.f32.xlu1 %v375_v19 }
 0x30c   :  { %v334_v21 = vpop.f32.mrf.mxu2 }
 0x30d   :  { %v2596_v22 = vadd.f32 %v334_v21, %v2593_v20 }
 0x30f   :  { %v378_v23 = vsel %vm359_vm1, %v2596_v22, -inf }
 0x310   :  { %379 = vmax.xlane.f32.xlu0 %v378_v23 }
 0x314   :  { %v336_v25 = vpop.f32.mrf.mxu2 }
 0x315   :  { %v2603_v26 = vadd.f32 %v336_v25, %v2600_v24 }
 0x317   :  { %v381_v27 = vsel %vm359_vm1, %v2603_v26, -inf }
 0x318   :  { %382 = vmax.xlane.f32.xlu1 %v381_v27 }
 0x31c   :  { %v339_v29 = vpop.f32.mrf.mxu2 }
 0x31d   :  { %v2610_v30 = vadd.f32 %v339_v29, %v2607_v28 }
 0x31f   :  { %v384_v31 = vsel %vm359_vm1, %v2610_v30, -inf }
 0x320   :  { %385 = vmax.xlane.f32.xlu0 %v384_v31 }
 0x324   :  { %v341_v33 = vpop.f32.mrf.mxu2 }
 0x325   :  { %v342_v34 = vadd.f32 %v341_v33, %v2614_v32 }
 0x327   :  { %v387_v37 = vsel %vm359_vm1, %v342_v34, -inf }
 0x328   :  { %388 = vmax.xlane.f32.xlu2 %v387_v37 }
 0x32c   :  { %v2622_v43 = vpop.f32.mrf.mxu2 }
 0x331   :  { %264 = vrot.lane.b32.xlu1 %v2509_v0, %s2303_s26 }
 0x334   :  { %v346_v47 = vpop.f32.mrf.mxu2 }
 0x335   :  { %v2629_v60 = vadd.f32 %v346_v47, %v2626_v45 }
 0x337   :  { %v393_v2 = vsel %vm359_vm1, %v2629_v60, -inf }
 0x33c   :  { %v349_v33 = vpop.f32.mrf.mxu2 }
 0x33d   :  { %v2651_v37 = vadd.f32 %v349_v33, %v2624_v44 }
 0x353   :  { %v362_v53 = vpop.xlane.xlu0 %361 }
 0x354   :  { %v408_v57 = vsub.f32 %v320_v59, %v362_v53 }
 0x356   :  { %v424_v62 = vmul.f32 1.442695, %v408_v57  ;;  %v396_v57 = vsel %vm359_vm1, %v2651_v37, -inf }
 0x358   :  { %2142 = vpow2.f32 %v424_v62 }
 0x35b   :  { %v365_v5 = vpop.xlane.xlu1 %364  ;;  %394 = vmax.xlane.f32.xlu1 %v393_v2 }
 0x35c   :  { %v409_v7 = vsub.f32 %v322_v1, %v365_v5 }
 0x35e   :  { %v2633_v9 = vpop.eup %2142  ;;  %v426_v11 = vmul.f32 1.442695, %v409_v7 }
 0x35f   :  { %v456_v13 = vsel %vm359_vm1, %v2633_v9, 0.0 }
 0x360   :  { %2144 = vpow2.f32 %v426_v11  ;;  %457 = vadd.xlane.f32.xlu2 %v456_v13 }
 0x363   :  { %v368_v59 = vpop.xlane.xlu1 %367 }
 0x364   :  { %v410_v15 = vsub.f32 %v325_v6, %v368_v59 }
 0x366   :  { %v2637_v17 = vpop.eup %2144  ;;  %v428_v19 = vmul.f32 1.442695, %v410_v15 }
 0x367   :  { %v459_v21 = vsel %vm359_vm1, %v2637_v17, 0.0 }
 0x368   :  { %2146 = vpow2.f32 %v428_v19  ;;  %460 = vadd.xlane.f32.xlu0 %v459_v21 }
 0x36b   :  { %v371_v23 = vpop.xlane.xlu1 %370 }
 0x36c   :  { %v411_v1 = vsub.f32 %v2575_v10, %v371_v23 }
 0x36e   :  { %v2642_v25 = vpop.eup %2146  ;;  %v430_v27 = vmul.f32 1.442695, %v411_v1  ;;  %v351_v1 = vpop.f32.mrf.mxu2 }
 0x36f   :  { %v462_v29 = vsel %vm359_vm1, %v2642_v25, 0.0 }
 0x370   :  { %2148 = vpow2.f32 %v430_v27  ;;  %463 = vadd.xlane.f32.xlu2 %v462_v29 }
 0x373   :  { %v374_v5 = vpop.xlane.xlu0 %373 }
 0x376   :  { %v2646_v6 = vpop.eup %2148 }
 0x377   :  { %v465_v31 = vsel %vm359_vm1, %v2646_v6, 0.0 }
 0x378   :  { %466 = vadd.xlane.f32.xlu1 %v465_v31 }
 0x37b   :  { %v377_v47 = vpop.xlane.xlu1 %376 }
 0x37c   :  { %v413_v10 = vsub.f32 %v2589_v18, %v377_v47  ;;  %268 = vrot.lane.b32.xlu0 %v2517_v4, %s2303_s26  ;;  %v412_v18 = vsub.f32 %v2582_v14, %v374_v5 }
 0x37e   :  { %v434_v53 = vmul.f32 1.442695, %v413_v10  ;;  %v432_v7 = vmul.f32 1.442695, %v412_v18 }
 0x380   :  { %2150 = vpow2.f32 %v434_v53  ;;  %397 = vmax.xlane.f32.xlu1 %v396_v57  ;;  %v2684_v53 = vadd.f32 %v2622_v43, %v2620_v42 }
 0x381   :  { %2152 = vpow2.f32 %v432_v7 }
 0x383   :  { %v380_v29 = vpop.xlane.xlu0 %379 }
 0x386   :  { %v2658_v62 = vpop.eup %2150 }
 0x387   :  { %v471_v2 = vsel %vm359_vm1, %v2658_v62, 0.0  ;;  %v2666_v23 = vpop.eup %2152 }
 0x388   :  { %472 = vadd.xlane.f32.xlu1 %v471_v2  ;;  %266 = vrot.lane.b32.xlu2 %v2472_v52, %s2303_s26  ;;  %v468_v14 = vsel %vm359_vm1, %v2666_v23, 0.0 }
 0x38b   :  { %v383_v11 = vpop.xlane.xlu1 %382 }
 0x38c   :  { %v415_v15 = vsub.f32 %v2603_v26, %v383_v11 }
 0x38e   :  { %v438_v21 = vmul.f32 1.442695, %v415_v15 }
 0x393   :  { %v386_v43 = vpop.xlane.xlu0 %385 }
 0x39b   :  { %v389_v13 = vpop.xlane.xlu2 %388 }
 0x39c   :  { %v417_v59 = vsub.f32 %v342_v34, %v389_v13  ;;  %v414_v34 = vsub.f32 %v2596_v22, %v380_v29  ;;  %v390_v22 = vsel %vm359_vm1, %v2684_v53, -inf  ;;  %v354_v29 = vpop.f32.mrf.mxu2 }
 0x39e   :  { %v442_v19 = vmul.f32 1.442695, %v417_v59  ;;  %v436_v10 = vmul.f32 1.442695, %v414_v34 }
 0x3a0   :  { %2154 = vpow2.f32 %v442_v19 }
 0x3a1   :  { %2156 = vpow2.f32 %v438_v21 }
 0x3a2   :  { %2158 = vpow2.f32 %v436_v10 }
 0x3a3   :  { %v2668_v27 = vpop.permute.xlu1 %264 }
 0x3a4   :  { %v2671_v31 = vadd.f32 %v351_v1, %v2668_v27 }
 0x3a6   :  { %469 = vadd.xlane.f32.xlu0 %v468_v14  ;;  %v399_v26 = vsel %vm359_vm1, %v2671_v31, -inf  ;;  %v2678_v33 = vpop.eup %2154  ;;  %v416_v14 = vsub.f32 %v2610_v30, %v386_v43 }
 0x3a7   :  { %400 = vmax.xlane.f32.xlu1 %v399_v26  ;;  %v2680_v47 = vpop.eup %2156  ;;  %v483_v57 = vsel %vm359_vm1, %v2678_v33, 0.0 }
 0x3a8   :  { %v477_v2 = vsel %vm359_vm1, %v2680_v47, 0.0  ;;  %v2692_v5 = vpop.eup %2158  ;;  %v440_v34 = vmul.f32 1.442695, %v416_v14 }
 0x3a9   :  { %v474_v18 = vsel %vm359_vm1, %v2692_v5, 0.0 }
 0x3ae   :  { %484 = vadd.xlane.f32.xlu0 %v483_v57 }
 0x3af   :  { %478 = vadd.xlane.f32.xlu1 %v477_v2 }
 0x3b1   :  { %391 = vmax.xlane.f32.xlu2 %v390_v22  ;;  %v356_v22 = vpop.f32.mrf.mxu2 }
 0x3b9   :  { %475 = vadd.xlane.f32.xlu2 %v474_v18 }
 0x3ce   :  { %v395_v15 = vpop.xlane.xlu1 %394 }
 0x3d3   :  { %v458_v7 = vpop.xlane.xlu2 %457 }
 0x3d4   :  { %2160 = vrcp.f32 %v458_v7 }
 0x3da   :  { %v2161_v13 = vpop.eup %2160 }
 0x3db   :  { %v461_v11 = vpop.xlane.xlu0 %460  ;;  %v520_v21 = vmul.f32 %v2161_v13, %v2633_v9  ;;  %v419_v9 = vsub.f32 %v2629_v60, %v395_v15 }
 0x3dc   :  { %2162 = vrcp.f32 %v461_v11 }
 0x3dd   :  { %v446_v7 = vmul.f32 1.442695, %v419_v9 }
 0x3e2   :  { %v2163_v59 = vpop.eup %2162 }
 0x3e3   :  { %v464_v19 = vpop.xlane.xlu2 %463  ;;  %v521_v1 = vmul.f32 %v2163_v59, %v2637_v17 }
 0x3e4   :  { %2164 = vrcp.f32 %v464_v19 }
 0x3e5   :  { %v536_v26 = vpack.c.bf16 %v521_v1, %v520_v21 }
 0x3e7   :  { %1836 = vmatmul.msk.bf16.vlgmr.msra.gmra.mxu3 %vm359_vm1, %v536_v26 }
 0x3ea   :  { %v2165_v43 = vpop.eup %2164 }
 0x3eb   :  { %v467_v10 = vpop.xlane.xlu1 %466  ;;  %v2700_v57 = vpop.permute.xlu2 %266  ;;  %v522_v15 = vmul.f32 %v2165_v43, %v2642_v25 }
 0x3ec   :  { %2166 = vrcp.f32 %v467_v10  ;;  %v2703_v2 = vadd.f32 %v354_v29, %v2700_v57 }
 0x3ed   :  { %2168 = vpow2.f32 %v440_v34 }
 0x3ee   :  { %v2706_v17 = vpop.permute.xlu0 %268  ;;  %v402_v30 = vsel %vm359_vm1, %v2703_v2, -inf  ;;  %2170 = vpow2.f32 %v446_v7 }
 0x3ef   :  { %v2711_v18 = vadd.f32 %v356_v22, %v2706_v17  ;;  %403 = vmax.xlane.f32.xlu2 %v402_v30 }
 0x3f1   :  { %v405_v11 = vsel %vm359_vm1, %v2711_v18, -inf }
 0x3f2   :  { %v2167_v13 = vpop.eup %2166  ;;  %406 = vmax.xlane.f32.xlu1 %v405_v11 }
 0x3f3   :  { %v2715_v59 = vpop.eup %2168  ;;  %v398_v60 = vpop.xlane.xlu1 %397  ;;  %v523_v19 = vmul.f32 %v2167_v13, %v2646_v6 }
 0x3f4   :  { %v420_v21 = vsub.f32 %v2651_v37, %v398_v60  ;;  %v480_v14 = vsel %vm359_vm1, %v2715_v59, 0.0  ;;  %v2723_v26 = vpop.eup %2170 }
 0x3f5   :  { %v537_v1 = vpack.c.bf16 %v523_v19, %v522_v15  ;;  %v489_v25 = vsel %vm359_vm1, %v2723_v26, 0.0 }
 0x3f6   :  { %v448_v29 = vmul.f32 1.442695, %v420_v21 }
 0x3f7   :  { %481 = vadd.xlane.f32.xlu2 %v480_v14  ;;  %1837 = vmatmul.msk.bf16.gmra.mxu3 %vm359_vm1, %v537_v1 }
 0x3f8   :  { %2172 = vpow2.f32 %v448_v29 }
 0x3fb   :  { %v473_v37 = vpop.xlane.xlu1 %472 }
 0x3fc   :  { %2174 = vrcp.f32 %v473_v37 }
 0x3fe   :  { %v2725_v34 = vpop.eup %2172 }
 0x3ff   :  { %490 = vadd.xlane.f32.xlu2 %v489_v25  ;;  %v492_v6 = vsel %vm359_vm1, %v2725_v34, 0.0 }
 0x400   :  { %493 = vadd.xlane.f32.xlu0 %v492_v6 }
 0x402   :  { %v2175_v9 = vpop.eup %2174 }
 0x403   :  { %v525_v7 = vmul.f32 %v2175_v9, %v2658_v62 }
 0x419   :  { %v470_v10 = vpop.xlane.xlu0 %469 }
 0x41a   :  { %2176 = vrcp.f32 %v470_v10  ;;  %v401_v22 = vpop.xlane.xlu1 %400 }
 0x41b   :  { %v421_v15 = vsub.f32 %v2671_v31, %v401_v22 }
 0x41d   :  { %v450_v1 = vmul.f32 1.442695, %v421_v15 }
 0x420   :  { %v2177_v30 = vpop.eup %2176 }
 0x421   :  { %v524_v43 = vmul.f32 %v2177_v30, %v2666_v23 }
 0x422   :  { %v479_v21 = vpop.xlane.xlu1 %478 }
 0x423   :  { %v538_v11 = vpack.c.bf16 %v525_v7, %v524_v43  ;;  %v485_v7 = vpop.xlane.xlu0 %484 }
 0x424   :  { %v392_v13 = vpop.xlane.xlu2 %391 }
 0x425   :  { %v418_v60 = vsub.f32 %v2684_v53, %v392_v13  ;;  %1838 = vmatmul.msk.bf16.gmra.mxu3 %vm359_vm1, %v538_v11 }
 0x427   :  { %v444_v19 = vmul.f32 1.442695, %v418_v60 }
 0x429   :  { %2178 = vpow2.f32 %v444_v19 }
 0x42a   :  { %2180 = vrcp.f32 %v479_v21 }
 0x42c   :  { %v476_v29 = vpop.xlane.xlu2 %475 }
 0x42d   :  { %2182 = vrcp.f32 %v476_v29 }
 0x42e   :  { %2184 = vpow2.f32 %v450_v1 }
 0x42f   :  { %v2179_v14 = vpop.eup %2178 }
 0x430   :  { %v486_v23 = vsel %vm359_vm1, %v2179_v14, 0.0  ;;  %v2181_v62 = vpop.eup %2180 }
 0x431   :  { %487 = vadd.xlane.f32.xlu1 %v486_v23  ;;  %v527_v6 = vmul.f32 %v2181_v62, %v2680_v47 }
 0x433   :  { %v2183_v25 = vpop.eup %2182 }
 0x434   :  { %v526_v53 = vmul.f32 %v2183_v25, %v2692_v5  ;;  %v2739_v37 = vpop.eup %2184 }
 0x435   :  { %v495_v10 = vsel %vm359_vm1, %v2739_v37, 0.0 }
 0x436   :  { %v539_v31 = vpack.c.bf16 %v527_v6, %v526_v53 }
 0x438   :  { %1839 = vmatmul.msk.bf16.gmra.mxu3 %vm359_vm1, %v539_v31 }
 0x439   :  { %496 = vadd.xlane.f32.xlu1 %v495_v10 }
 0x462   :  { %v404_v9 = vpop.xlane.xlu2 %403 }
 0x463   :  { %v422_v22 = vsub.f32 %v2703_v2, %v404_v9 }
 0x465   :  { %v452_v30 = vmul.f32 1.442695, %v422_v22  ;;  %v407_v43 = vpop.xlane.xlu1 %406 }
 0x466   :  { %v423_v11 = vsub.f32 %v2711_v18, %v407_v43 }
 0x467   :  { %2186 = vpow2.f32 %v452_v30 }
 0x468   :  { %v454_v5 = vmul.f32 1.442695, %v423_v11  ;;  %2188 = vrcp.f32 %v485_v7 }
 0x46a   :  { %2190 = vpow2.f32 %v454_v5  ;;  %v482_v47 = vpop.xlane.xlu2 %481  ;;  %v578_v13 = vpop.f32.mrf.mxu3 }
 0x46b   :  { %2192 = vrcp.f32 %v482_v47  ;;  %v618_v25 = vmul.f32 %v578_v13, %v2413_v38 }
 0x46d   :  { %v2746_v60 = vpop.eup %2186  ;;  %v634_v31 = vsel %vm106_vm0, %v618_v25, 0.0 }
 0x46e   :  { %v498_v15 = vsel %vm359_vm1, %v2746_v60, 0.0  ;;  %v2189_v19 = vpop.eup %2188 }
 0x46f   :  { %499 = vadd.xlane.f32.xlu2 %v498_v15  ;;  %v529_v23 = vmul.f32 %v2189_v19, %v2678_v33 }
 0x470   :  { %v2191_v2 = vpop.eup %2190 }
 0x471   :  { %v2193_v21 = vpop.eup %2192  ;;  %v501_v1 = vsel %vm359_vm1, %v2191_v2, 0.0 }
 0x472   :  { %v580_v29 = vpop.f32.mrf.mxu3  ;;  %502 = vadd.xlane.f32.xlu0 %v501_v1  ;;  %v528_v18 = vmul.f32 %v2193_v21, %v2715_v59  ;;  %v491_v11 = vpop.xlane.xlu2 %490 }
 0x473   :  { %v619_v22 = vmul.f32 %v580_v29, %v2477_v54  ;;  %2194 = vrcp.f32 %v491_v11  ;;  %v494_v29 = vpop.xlane.xlu0 %493 }
 0x474   :  { %v540_v62 = vpack.c.bf16 %v529_v23, %v528_v18 }
 0x475   :  { %v649_v33 = vsel %vm106_vm0, %v619_v22, 0.0 }
 0x476   :  { %1840 = vmatmul.msk.bf16.gmra.mxu3 %vm359_vm1, %v540_v62 }
 0x479   :  { %v2195_v5 = vpop.eup %2194 }
 0x47a   :  { %v583_v53 = vpop.f32.mrf.mxu3 }
 0x47b   :  { %v620_v6 = vmul.f32 %v583_v53, %v2420_v39 }
 0x47d   :  { %v635_v10 = vsel %vm106_vm0, %v620_v6, 0.0 }
 0x47e   :  { %v636_v9 = vadd.f32 %v635_v10, %v634_v31 }
 0x482   :  { %v585_v30 = vpop.f32.mrf.mxu3 }
 0x483   :  { %v621_v59 = vmul.f32 %v585_v30, %v2485_v56  ;;  %v531_v56 = vmul.f32 %v2195_v5, %v2723_v26  ;;  %v2077_v5 = vld [vmem:[%s3424_s1 + $0x78] sm:$0xf0] }
 0x485   :  { %v650_v43 = vsel %vm106_vm0, %v621_v59, 0.0 }
 0x486   :  { %v651_v7 = vadd.f32 %v650_v43, %v649_v33 }
 0x4a4   :  { %v488_v38 = vpop.xlane.xlu1 %487 }
 0x4a5   :  { %2196 = vrcp.f32 %v488_v38 }
 0x4a8   :  { %v588_v39 = vpop.f32.mrf.mxu3 }
 0x4a9   :  { %v622_v47 = vmul.f32 %v588_v39, %v2427_v40  ;;  %v1858_v39 = vld [vmem:[%s3424_s1 + $0x6c] sm:$0xf] }
 0x4ab   :  { %v2197_v13 = vpop.eup %2196  ;;  %v637_v15 = vsel %vm106_vm0, %v622_v47, 0.0  ;;  %v1859_v47 = vor.u32 %v2077_v5, %v1858_v39 }
 0x4ac   :  { %v638_v54 = vadd.f32 %v637_v15, %v636_v9  ;;  %v530_v19 = vmul.f32 %v2197_v13, %v2179_v14  ;;  %v497_v21 = vpop.xlane.xlu1 %496 }
 0x4ad   :  { %2198 = vrcp.f32 %v497_v21  ;;  %706 = vmatpush.bf16.msra.mxu0 %v1859_v47  ;;  %v1846_v21 = vld [vmem:[%s3424_s1 + $0xc] sm:$0xf] }
 0x4ae   :  { %v541_v1 = vpack.c.bf16 %v531_v56, %v530_v19  ;;  %2200 = vrcp.f32 %v494_v29  ;;  %v2075_v19 = vld [vmem:[%s3424_s1 + $0x38] sm:$0xf0] }
 0x4b0   :  { %v590_v18 = vpop.f32.mrf.mxu3  ;;  %1841 = vmatmul.msk.bf16.gmra.mxu3 %vm359_vm1, %v541_v1  ;;  %v2074_v1 = vld [vmem:[%s3424_s1 + $0x18] sm:$0xf0] }
 0x4b1   :  { %v623_v23 = vmul.f32 %v590_v18, %v2493_v58  ;;  %v1847_v29 = vor.u32 %v2074_v1, %v1846_v21 }
 0x4b3   :  { %v652_v62 = vsel %vm106_vm0, %v623_v23, 0.0  ;;  %v2199_v25 = vpop.eup %2198 }
 0x4b4   :  { %v653_v40 = vadd.f32 %v652_v62, %v651_v7  ;;  %v2201_v53 = vpop.eup %2200  ;;  %v533_v6 = vmul.f32 %v2199_v25, %v2739_v37 }
 0x4b5   :  { %v532_v31 = vmul.f32 %v2201_v53, %v2725_v34 }
 0x4b7   :  { %v542_v9 = vpack.c.bf16 %v533_v6, %v532_v31 }
 0x4bb   :  { %v593_v14 = vpop.f32.mrf.mxu3 }
 0x4bc   :  { %v624_v26 = vmul.f32 %v593_v14, %v2452_v48 }
 0x4be   :  { %v639_v10 = vsel %vm106_vm0, %v624_v26, 0.0 }
 0x4bf   :  { %v640_v22 = vadd.f32 %v639_v10, %v638_v54  ;;  %v1850_v54 = vld [vmem:[%s3424_s1 + $0x2c] sm:$0xf] }
 0x4c0   :  { %1842 = vmatmul.msk.bf16.gmra.mxu3 %vm359_vm1, %v542_v9  ;;  %v1851_v56 = vor.u32 %v2075_v19, %v1850_v54  ;;  %v2304_v19 = vmov 64.0  }
 0x4c3   :  { %v595_v48 = vpop.f32.mrf.mxu3 }
 0x4c4   :  { %v625_v62 = vmul.f32 %v595_v48, %v2434_v41 }
 0x4c6   :  { %v654_v14 = vsel %vm106_vm0, %v625_v62, 0.0 }
 0x4c7   :  { %v655_v41 = vadd.f32 %v654_v14, %v653_v40 }
 0x4e2   :  { %v500_v58 = vpop.xlane.xlu2 %499 }
 0x4e3   :  { %2202 = vrcp.f32 %v500_v58 }
 0x4e5   :  { %v503_v30 = vpop.xlane.xlu0 %502 }
 0x4e6   :  { %2204 = vrcp.f32 %v503_v30 }
 0x4e7   :  { %2206 = vrcp.f32 %v2304_v19 }
 0x4e9   :  { %v2203_v59 = vpop.eup %2202 }
 0x4ea   :  { %v534_v43 = vmul.f32 %v2203_v59, %v2746_v60  ;;  %v1854_v60 = vld [vmem:[%s3424_s1 + $0x4c] sm:$0xf] }
 0x4ec   :  { %v2205_v33 = vpop.eup %2204 }
 0x4ed   :  { %v535_v37 = vmul.f32 %v2205_v33, %v2191_v2  ;;  %v2076_v2 = vld [vmem:[%s3424_s1 + $0x58] sm:$0xf0] }
 0x4ee   :  { %v1855_v15 = vor.u32 %v2076_v2, %v1854_v60 }
 0x4ef   :  { %v543_v7 = vpack.c.bf16 %v535_v37, %v534_v43 }
 0x4f0   :  { %707 = vmatpush.bf16.msra.mxu0 %v1855_v15 }
 0x4f1   :  { %1843 = vmatmul.msk.bf16.gmra.mxu3 %vm359_vm1, %v543_v7 }
 0x4f4   :  { %708 = vmatpush.bf16.msra.mxu0 %v1851_v56  ;;  %v2207_v56 = vpop.eup %2206 }
 0x4f5   :  { %v727_v21 = vmul.f32 64.0, %v2207_v56  ;;  %vm731_vm2 = vweird.f32 %v2207_v56 }
 0x4f7   :  { %v728_v1 = vsub.f32 1.0, %v727_v21 }
 0x4f8   :  { %709 = vmatpush.bf16.msra.mxu0 %v1847_v29 }
 0x4f9   :  { %v598_v34 = vpop.f32.mrf.mxu3  ;;  %v729_v29 = vmul.f32 %v2207_v56, %v728_v1  ;;  %v2084_v1 = vld [vmem:[%s3427_s2 + $0x10] sm:$0xff] }
 0x4fa   :  { %v626_v25 = vmul.f32 %v598_v34, %v2457_v49 }
 0x4fc   :  { %v641_v10 = vsel %vm106_vm0, %v626_v25, 0.0 }
 0x4fd   :  { %v642_v33 = vadd.f32 %v641_v10, %v640_v22  ;;  %v2123_v22 = vld [vmem:[%s3425_s3 + $0x16] ss:$0 sm:$0xff] }
 0x501   :  { %v600_v11 = vpop.f32.mrf.mxu3 }
 0x502   :  { %v627_v53 = vmul.f32 %v600_v11, %v2445_v46 }
 0x504   :  { %v656_v9 = vsel %vm106_vm0, %v627_v53, 0.0 }
 0x505   :  { %v657_v43 = vadd.f32 %v656_v9, %v655_v41  ;;  %v1875_v9 = vld [vmem:[%s3424_s1 + $0x68] sm:$0xf] }
 0x506   :  { %v1871_v41 = vld [vmem:[%s3424_s1 + $0x48] sm:$0xf] }
 0x533   :  { %v603_v38 = vpop.f32.mrf.mxu3 }
 0x534   :  { %v628_v26 = vmul.f32 %v603_v38, %v2462_v50 }
 0x536   :  { %v643_v49 = vsel %vm106_vm0, %v628_v26, 0.0 }
 0x537   :  { %v644_v37 = vadd.f32 %v643_v49, %v642_v33  ;;  %v2080_v49 = vld [vmem:[%s3424_s1 + $0x54] sm:$0xf0] }
 0x538   :  { %v2079_v33 = vld [vmem:[%s3424_s1 + $0x34] sm:$0xf0] }
 0x53b   :  { %v605_v13 = vpop.f32.mrf.mxu3 }
 0x53c   :  { %v629_v31 = vmul.f32 %v605_v13, %v2504_v63 }
 0x53e   :  { %v658_v46 = vsel %vm106_vm0, %v629_v31, 0.0 }
 0x53f   :  { %v659_v7 = vadd.f32 %v658_v46, %v657_v43  ;;  %v1872_v46 = vor.u32 %v2080_v49, %v1871_v41  ;;  %v1863_v43 = vld [vmem:[%s3424_s1 + $0x8] sm:$0xf] }
 0x543   :  { %v608_v18 = vpop.f32.mrf.mxu3 }
 0x544   :  { %v630_v58 = vmul.f32 %v608_v18, %v2467_v51  ;;  %v730_v18 = vadd.f32 %v2207_v56, %v729_v29 }
 0x546   :  { %v645_v50 = vsel %vm106_vm0, %v630_v58, 0.0  ;;  %v2081_v58 = vld [vmem:[%s3424_s1 + $0x74] sm:$0xf0] }
 0x547   :  { %v646_v40 = vadd.f32 %v645_v50, %v644_v37  ;;  %v2078_v37 = vld [vmem:[%s3424_s1 + $0x14] sm:$0xf0] }
 0x54b   :  { %v610_v23 = vpop.f32.mrf.mxu3 }
 0x54c   :  { %v631_v30 = vmul.f32 %v610_v23, %v2509_v0  ;;  %v2825_v23 = vsel %vm731_vm2, %v2207_v56, %v730_v18 }
 0x54e   :  { %v660_v63 = vsel %vm106_vm0, %v631_v30, 0.0  ;;  %v1876_v30 = vor.u32 %v2081_v58, %v1875_v9 }
 0x54f   :  { %v661_v34 = vadd.f32 %v660_v63, %v659_v7 }
 0x550   :  { %819 = vmatpush.bf16.msra.mxu1 %v1876_v30  ;;  %v2082_v30 = vld [vmem:[%s3427_s2] sm:$0xff] }
 0x554   :  { %820 = vmatpush.bf16.msra.mxu1 %v1872_v46 }
 0x574   :  { %v613_v6 = vpop.f32.mrf.mxu3 }
 0x575   :  { %v632_v59 = vmul.f32 %v613_v6, %v2472_v52 }
 0x577   :  { %v647_v51 = vsel %vm106_vm0, %v632_v59, 0.0  ;;  %v1867_v59 = vld [vmem:[%s3424_s1 + $0x28] sm:$0xf] }
 0x578   :  { %v648_v38 = vadd.f32 %v647_v51, %v646_v40  ;;  %v1868_v63 = vor.u32 %v2079_v33, %v1867_v59 }
 0x57a   :  { %821 = vmatpush.bf16.msra.mxu1 %v1868_v63  ;;  %v2127_v63 = vld [vmem:[%s3425_s3 + $0x18] ss:$0 sm:$0xff] }
 0x57c   :  { %v615_v48 = vpop.f32.mrf.mxu3 }
 0x57d   :  { %v633_v0 = vmul.f32 %v615_v48, %v2517_v4  ;;  %v1864_v48 = vor.u32 %v2078_v37, %v1863_v43 }
 0x57f   :  { %v662_v11 = vsel %vm106_vm0, %v633_v0, 0.0  ;;  %822 = vmatpush.bf16.msra.mxu1 %v1864_v48  ;;  %v2089_v0 = vld [vmem:[%s3427_s2 + $0x38] sm:$0xff] }
 0x580   :  { %v663_v39 = vadd.f32 %v662_v11, %v661_v34  ;;  %898 = vmatpush.bf16.msrb.mxu2 %v2089_v0  ;;  %v2088_v11 = vld [vmem:[%s3427_s2 + $0x30] sm:$0xff] }
 0x582   :  { %v664_v52 = vpack.c.bf16 %v663_v39, %v648_v38 }
 0x584   :  { %1860 = vmatmul.msk.bf16.vlgmr.msra.gmra.mxu0 %vm106_vm0, %v664_v52  ;;  %899 = vmatpush.bf16.msrb.mxu2 %v2088_v11 }
 0x601   :  { %v711_v5 = vpop.f32.mrf.mxu0 }
 0x602   :  { %v712_v47 = vadd.f32 %v2123_v22, %v711_v5 }
 0x604   :  { %v716_v13 = vadd.f32 %v712_v47, %v2402_v35 }
 0x606   :  { %v720_v60 = vsel %vm106_vm0, %v716_v13, 0.0 }
 0x607   :  { %721 = vadd.xlane.f32.xlu1 %v720_v60 }
 0x609   :  { %v713_v4 = vpop.f32.mrf.mxu0 }
 0x60a   :  { %v714_v2 = vadd.f32 %v2123_v22, %v713_v4  ;;  %v2087_v22 = vld [vmem:[%s3427_s2 + $0x28] sm:$0xff] }
 0x60b   :  { %900 = vmatpush.bf16.msrb.mxu2 %v2087_v22 }
 0x60c   :  { %v717_v15 = vadd.f32 %v714_v2, %v2404_v36 }
 0x60e   :  { %v723_v54 = vsel %vm106_vm0, %v717_v15, 0.0 }
 0x60f   :  { %724 = vadd.xlane.f32.xlu2 %v723_v54  ;;  %v2085_v54 = vld [vmem:[%s3427_s2 + $0x18] sm:$0xff] }
 0x67a   :  { %v722_v35 = vpop.xlane.xlu1 %721 }
 0x67b   :  { %v733_v62 = vmul.f32 %v2825_v23, %v722_v35  ;;  %v2124_v35 = vld [vmem:[%s3425_s3 + $0x19] ss:$0 sm:$0xff] }
 0x67d   :  { %v735_v25 = vsub.f32 %v716_v13, %v733_v62  ;;  %v2086_v13 = vld [vmem:[%s3427_s2 + $0x20] sm:$0xff] }
 0x67e   :  { %901 = vmatpush.bf16.msrb.mxu2 %v2086_v13 }
 0x67f   :  { %v737_v53 = vmul.f32 %v735_v25, %v735_v25 }
 0x681   :  { %v739_v36 = vsel %vm106_vm0, %v737_v53, 0.0  ;;  %v2083_v53 = vld [vmem:[%s3427_s2 + $0x8] sm:$0xff] }
 0x682   :  { %v725_v6 = vpop.xlane.xlu2 %724  ;;  %740 = vadd.xlane.f32.xlu0 %v739_v36  ;;  %902 = vmatpush.bf16.msrb.mxu2 %v2085_v54  ;;  %v2097_v54 = vld [vmem:[%s3424_s1 + $0xec] sm:$0xf0] }
 0x683   :  { %v734_v14 = vmul.f32 %v2825_v23, %v725_v6 }
 0x685   :  { %v2830_v26 = vsub.f32 %v717_v15, %v734_v14 }
 0x686   :  { %903 = vmatpush.bf16.msrb.mxu2 %v2084_v1 }
 0x687   :  { %v738_v31 = vmul.f32 %v2830_v26, %v2830_v26 }
 0x689   :  { %v742_v10 = vsel %vm106_vm0, %v738_v31, 0.0 }
 0x68a   :  { %743 = vadd.xlane.f32.xlu1 %v742_v10  ;;  %904 = vmatpush.bf16.msrb.mxu2 %v2083_v53 }
 0x68e   :  { %905 = vmatpush.bf16.msrb.mxu2 %v2082_v30 }
 0x6f5   :  { %v741_v50 = vpop.xlane.xlu0 %740 }
 0x6f6   :  { %v745_v7 = vmul.f32 %v741_v50, %v2825_v23 }
 0x6f8   :  { %v747_v51 = vadd.f32 1e-05, %v745_v7 }
 0x6fa   :  { %2208 = vrsqrt.f32 %v747_v51  ;;  %vm755_vm4 = vweird.f32 %v747_v51 }
 0x6fd   :  { %v744_v40 = vpop.xlane.xlu1 %743 }
 0x6fe   :  { %v746_v34 = vmul.f32 %v744_v40, %v2825_v23 }
 0x700   :  { %v2209_v38 = vpop.eup %2208  ;;  %v748_v39 = vadd.f32 1e-05, %v746_v34 }
 0x701   :  { %v750_v52 = vmul.f32 %v2209_v38, %v747_v51  ;;  %vm756_vm3 = vweird.f32 %v2209_v38 }
 0x702   :  { %2210 = vrsqrt.f32 %v748_v39  ;;  %vm757_vm5 = vmor %vm755_vm4, %vm756_vm3  ;;  %vm765_vm7 = vweird.f32 %v748_v39 }
 0x703   :  { %v751_v5 = vmul.f32 %v2209_v38, %v750_v52 }
 0x705   :  { %v752_v47 = vmul.f32 0.5, %v751_v5 }
 0x707   :  { %v753_v60 = vsub.f32 1.5, %v752_v47 }
 0x708   :  { %v2211_v4 = vpop.eup %2210 }
 0x709   :  { %v754_v2 = vmul.f32 %v2209_v38, %v753_v60  ;;  %v760_v15 = vmul.f32 %v2211_v4, %v748_v39  ;;  %vm766_vm6 = vweird.f32 %v2211_v4 }
 0x70a   :  { %vm767_vm8 = vmor %vm765_vm7, %vm766_vm6 }
 0x70b   :  { %v761_v19 = vmul.f32 %v2211_v4, %v760_v15  ;;  %v758_v56 = vsel %vm757_vm5, %v2209_v38, %v754_v2  ;;  %v1944_v15 = vld [vmem:[%s3424_s1 + $0xe0] sm:$0xf] }
 0x70c   :  { %v769_v18 = vmul.f32 %v758_v56, %v735_v25  ;;  %v2125_v25 = vld [vmem:[%s3425_s3 + $0x1a] ss:$0 sm:$0xff]  ;;  %v1936_v56 = vld [vmem:[%s3424_s1 + $0xc0] sm:$0xf] }
 0x70d   :  { %v762_v21 = vmul.f32 0.5, %v761_v19  ;;  %v1945_v19 = vor.u32 %v2097_v54, %v1944_v15 }
 0x70e   :  { %v772_v14 = vmul.f32 %v2124_v35, %v769_v18  ;;  %v2093_v18 = vld [vmem:[%s3424_s1 + $0xac] sm:$0xf0] }
 0x70f   :  { %v763_v29 = vsub.f32 1.5, %v762_v21  ;;  %1023 = vmatpush.bf16.msrb.mxu1 %v1945_v19  ;;  %v2095_v21 = vld [vmem:[%s3424_s1 + $0xcc] sm:$0xf0] }
 0x710   :  { %v775_v10 = vadd.f32 %v2125_v25, %v772_v14  ;;  %v1937_v1 = vor.u32 %v2095_v21, %v1936_v56  ;;  %v2129_v21 = vld [vmem:[%s3425_s3 + $0x1c] ss:$0 sm:$0xff] }
 0x711   :  { %v764_v62 = vmul.f32 %v2211_v4, %v763_v29  ;;  %v1928_v29 = vld [vmem:[%s3424_s1 + $0xa0] sm:$0xf] }
 0x712   :  { %v1929_v53 = vor.u32 %v2093_v18, %v1928_v29 }
 0x713   :  { %v768_v36 = vsel %vm767_vm8, %v2211_v4, %v764_v62  ;;  %1024 = vmatpush.bf16.msrb.mxu1 %v1937_v1 }
 0x714   :  { %v770_v6 = vmul.f32 %v768_v36, %v2830_v26  ;;  %v2126_v26 = vld [vmem:[%s3425_s3 + $0x17] ss:$0 sm:$0xff]  ;;  %v2091_v36 = vld [vmem:[%s3424_s1 + $0x8c] sm:$0xf0] }
 0x716   :  { %v773_v31 = vmul.f32 %v2124_v35, %v770_v6  ;;  %v1920_v35 = vld [vmem:[%s3424_s1 + $0x80] sm:$0xf] }
 0x717   :  { %1025 = vmatpush.bf16.msrb.mxu1 %v1929_v53  ;;  %v1921_v14 = vor.u32 %v2091_v36, %v1920_v35 }
 0x718   :  { %v776_v9 = vadd.f32 %v2125_v25, %v773_v31  ;;  %v2096_v31 = vld [vmem:[%s3424_s1 + $0xe4] sm:$0xf] }
 0x71a   :  { %v777_v58 = vpack.c.bf16 %v776_v9, %v775_v10 }
 0x71b   :  { %1026 = vmatpush.bf16.msrb.mxu1 %v1921_v14  ;;  %v2990_v14 = vld [vmem:[%s3426_s4] sm:$0xff] }
 0x71c   :  { %1877 = vmatmul.msk.bf16.vlgmr.msra.gmra.mxu1 %vm106_vm0, %v777_v58 }
 0x799   :  { %v824_v41 = vpop.f32.mrf.mxu1 }
 0x79a   :  { %v825_v49 = vadd.f32 %v2126_v26, %v824_v41  ;;  %v1938_v41 = vld [vmem:[%s3424_s1 + $0xd0] sm:$0xf0] }
 0x79c   :  { %v829_v33 = vmax.f32 %v825_v49, 0.0  ;;  %v2130_v49 = vld [vmem:[%s3425_s3 + $0x1e] ss:$0 sm:$0xff] }
 0x7a1   :  { %v826_v46 = vpop.f32.mrf.mxu1 }
 0x7a2   :  { %v827_v59 = vadd.f32 %v2126_v26, %v826_v46 }
 0x7a4   :  { %v830_v43 = vmax.f32 %v827_v59, 0.0 }
 0x7a6   :  { %v831_v50 = vpack.c.bf16 %v830_v43, %v829_v33  ;;  %v2092_v43 = vld [vmem:[%s3424_s1 + $0xa4] sm:$0xf] }
 0x7a8   :  { %906 = vmatmul.bf16.vlgmr.msrb.gmra.mxu2 %v831_v50  ;;  %v1930_v50 = vld [vmem:[%s3424_s1 + $0xb0] sm:$0xf0] }
 0x82b   :  { %v907_v37 = vpop.f32.mrf.mxu2 }
 0x82c   :  { %v908_v7 = vadd.f32 %v2127_v63, %v907_v37 }
 0x82e   :  { %v912_v48 = vadd.f32 %v908_v7, %v775_v10  ;;  %v1946_v10 = vld [vmem:[%s3424_s1 + $0xf0] sm:$0xf0]  ;;  %v1933_v7 = vor.u32 %v2092_v43, %v1930_v50  ;;  %v3038_v50 = vld [vmem:[%s3426_s4 + $0x60] sm:$0xff] }
 0x82f   :  { %v1949_v30 = vor.u32 %v2096_v31, %v1946_v10  ;;  %v2998_v31 = vld [vmem:[%s3426_s4 + $0x10] sm:$0xff] }
 0x830   :  { %v916_v51 = vsel %vm106_vm0, %v912_v48, 0.0 }
 0x831   :  { %917 = vadd.xlane.f32.xlu2 %v916_v51  ;;  %1037 = vmatpush.bf16.msra.mxu1 %v1949_v30  ;;  %v1922_v51 = vld [vmem:[%s3424_s1 + $0x90] sm:$0xf0]  ;;  %v3006_v30 = vld [vmem:[%s3426_s4 + $0x20] sm:$0xff] }
 0x833   :  { %v909_v0 = vpop.f32.mrf.mxu2 }
 0x834   :  { %v910_v40 = vadd.f32 %v2127_v63, %v909_v0 }
 0x836   :  { %v913_v34 = vadd.f32 %v910_v40, %v776_v9  ;;  %v2094_v9 = vld [vmem:[%s3424_s1 + $0xc4] sm:$0xf] }
 0x837   :  { %v1941_v46 = vor.u32 %v2094_v9, %v1938_v41 }
 0x838   :  { %v919_v11 = vsel %vm106_vm0, %v913_v34, 0.0 }
 0x839   :  { %920 = vadd.xlane.f32.xlu0 %v919_v11  ;;  %1038 = vmatpush.bf16.msra.mxu1 %v1941_v46  ;;  %v3022_v46 = vld [vmem:[%s3426_s4 + $0x40] sm:$0xff] }
 0x83d   :  { %1039 = vmatpush.bf16.msra.mxu1 %v1933_v7 }
 0x84d   :  { %1054 = vrot.lane.b32.xlu0 %v2130_v49, %s2303_s26 }
 0x8a4   :  { %v918_v38 = vpop.xlane.xlu2 %917 }
 0x8a5   :  { %v922_v39 = vmul.f32 %v918_v38, %v2825_v23 }
 0x8a7   :  { %v2902_v52 = vsub.f32 %v912_v48, %v922_v39  ;;  %v2090_v48 = vld [vmem:[%s3424_s1 + $0x84] sm:$0xf] }
 0x8a9   :  { %v926_v22 = vmul.f32 %v2902_v52, %v2902_v52 }
 0x8ab   :  { %v928_v5 = vsel %vm106_vm0, %v926_v22, 0.0 }
 0x8ac   :  { %v921_v47 = vpop.xlane.xlu0 %920  ;;  %929 = vadd.xlane.f32.xlu1 %v928_v5 }
 0x8ad   :  { %v923_v13 = vmul.f32 %v921_v47, %v2825_v23 }
 0x8af   :  { %v2908_v60 = vsub.f32 %v913_v34, %v923_v13  ;;  %v1925_v34 = vor.u32 %v2090_v48, %v1922_v51  ;;  %v3051_v48 = vld [vmem:[%s3426_s4 + $0x8] sm:$0xff] }
 0x8b1   :  { %v927_v4 = vmul.f32 %v2908_v60, %v2908_v60  ;;  %1040 = vmatpush.bf16.msra.mxu1 %v1925_v34  ;;  %v3063_v34 = vld [vmem:[%s3426_s4 + $0x28] sm:$0xff] }
 0x8b3   :  { %v931_v2 = vsel %vm106_vm0, %v927_v4, 0.0 }
 0x8b4   :  { %932 = vadd.xlane.f32.xlu2 %v931_v2  ;;  %v2128_v2 = vld [vmem:[%s3425_s3 + $0x1b] ss:$0 sm:$0xff] }
 0x8bf   :  { %v1055_v35 = vpop.permute.xlu0 %1054 }
 0x91f   :  { %v930_v62 = vpop.xlane.xlu1 %929 }
 0x920   :  { %v934_v6 = vmul.f32 %v930_v62, %v2825_v23 }
 0x922   :  { %v936_v25 = vadd.f32 1e-05, %v934_v6 }
 0x924   :  { %2212 = vrsqrt.f32 %v936_v25  ;;  %vm944_vm10 = vweird.f32 %v936_v25 }
 0x927   :  { %v933_v58 = vpop.xlane.xlu2 %932 }
 0x928   :  { %v935_v26 = vmul.f32 %v933_v58, %v2825_v23 }
 0x92a   :  { %v2213_v59 = vpop.eup %2212  ;;  %v937_v33 = vadd.f32 1e-05, %v935_v26  ;;  %v3014_v26 = vld [vmem:[%s3426_s4 + $0x30] sm:$0xff] }
 0x92b   :  { %v939_v63 = vmul.f32 %v2213_v59, %v936_v25  ;;  %vm945_vm9 = vweird.f32 %v2213_v59 }
 0x92c   :  { %2214 = vrsqrt.f32 %v937_v33  ;;  %vm946_vm11 = vmor %vm944_vm10, %vm945_vm9  ;;  %vm954_vm13 = vweird.f32 %v937_v33  ;;  %vm1788_vm9 = vcmask 7174  }
 0x92d   :  { %v940_v37 = vmul.f32 %v2213_v59, %v939_v63 }
 0x92f   :  { %v941_v0 = vmul.f32 0.5, %v940_v37  ;;  %v3044_v37 = vld [vmem:[%s3426_s4 + $0x70] sm:$0xff] }
 0x931   :  { %v942_v40 = vsub.f32 1.5, %v941_v0  ;;  %v3057_v0 = vld [vmem:[%s3426_s4 + $0x18] sm:$0xff] }
 0x932   :  { %v2215_v11 = vpop.eup %2214 }
 0x933   :  { %v943_v38 = vmul.f32 %v2213_v59, %v942_v40  ;;  %v949_v39 = vmul.f32 %v2215_v11, %v937_v33  ;;  %vm955_vm12 = vweird.f32 %v2215_v11  ;;  %v3030_v33 = vld [vmem:[%s3426_s4 + $0x50] sm:$0xff] }
 0x934   :  { %vm956_vm14 = vmor %vm954_vm13, %vm955_vm12 }
 0x935   :  { %v950_v22 = vmul.f32 %v2215_v11, %v949_v39  ;;  %v947_v5 = vsel %vm946_vm11, %v2213_v59, %v943_v38  ;;  %v3069_v38 = vld [vmem:[%s3426_s4 + $0x38] sm:$0xff] }
 0x936   :  { %v958_v4 = vmul.f32 %v947_v5, %v2902_v52 }
 0x937   :  { %v951_v47 = vmul.f32 0.5, %v950_v22  ;;  %v3075_v22 = vld [vmem:[%s3426_s4 + $0x48] sm:$0xff] }
 0x938   :  { %v961_v56 = vmul.f32 %v2128_v2, %v958_v4  ;;  %v3087_v4 = vld [vmem:[%s3426_s4 + $0x68] sm:$0xff] }
 0x939   :  { %v952_v13 = vsub.f32 1.5, %v951_v47  ;;  %v3081_v47 = vld [vmem:[%s3426_s4 + $0x58] sm:$0xff] }
 0x93a   :  { %v2975_v29 = vadd.f32 %v2129_v21, %v961_v56 }
 0x93b   :  { %v953_v15 = vmul.f32 %v2215_v11, %v952_v13 }
 0x93d   :  { %v957_v54 = vsel %vm956_vm14, %v2215_v11, %v953_v15  ;;  %v3093_v15 = vld [vmem:[%s3426_s4 + $0x78] sm:$0xff] }
 0x93e   :  { %v959_v19 = vmul.f32 %v957_v54, %v2908_v60  ;;  %v2131_v60 = vld [vmem:[%s3425_s3 + $0x1d] ss:$0 sm:$0xff] }
 0x940   :  { %v962_v1 = vmul.f32 %v2128_v2, %v959_v19 }
 0x942   :  { %v2977_v18 = vadd.f32 %v2129_v21, %v962_v1 }
 0x944   :  { %v966_v52 = vpack.c.bf16 %v2977_v18, %v2975_v29 }
 0x946   :  { %1950 = vmatmul.msk.bf16.vlgmr.msrb.gmra.mxu1 %vm106_vm0, %v966_v52 }
 0x956   :  { %1951 = vmatmul.msk.bf16.vlgmr.msra.gmra.mxu1 %vm106_vm0, %v966_v52 }
 0x9c3   :  { %v1028_v62 = vpop.f32.mrf.mxu1 }
 0x9c4   :  { %v1057_v53 = vadd.f32 %v1055_v35, %v1028_v62  ;;  %v1049_v36 = vadd.f32 %v2131_v60, %v1028_v62 }
 0x9c6   :  { %1089 = vrot.lane.b32.xlu1 %v1057_v53, %s2303_s26  ;;  %v2993_v25 = vmul.f32 %v2990_v14, %v1049_v36  ;;  %v3001_v10 = vmul.f32 %v2998_v31, %v1049_v36  ;;  %v3009_v41 = vmul.f32 %v3006_v30, %v1049_v36  ;;  %v3017_v49 = vmul.f32 %v3014_v26, %v1049_v36 }
 0x9c7   :  { %v3025_v59 = vmul.f32 %v3022_v46, %v1049_v36  ;;  %v3033_v43 = vmul.f32 %v3030_v33, %v1049_v36  ;;  %v1075_v63 = vmul.f32 %v3038_v50, %v1049_v36  ;;  %v1077_v7 = vmul.f32 %v3044_v37, %v1049_v36  ;;  %v2132_v36 = vld [vmem:[%s3425_s3 + $0x1f] ss:$0 sm:$0xff] }
 0x9cb   :  { %v1030_v6 = vpop.f32.mrf.mxu1 }
 0x9cc   :  { %v1050_v9 = vadd.f32 %v2131_v60, %v1030_v6  ;;  %v1058_v58 = vadd.f32 %v1055_v35, %v1030_v6 }
 0x9ce   :  { %1091 = vrot.lane.b32.xlu2 %v1058_v58, %s2303_s26  ;;  %v1064_v51 = vmul.f32 %v3051_v48, %v1050_v9  ;;  %v1066_v40 = vmul.f32 %v3057_v0, %v1050_v9  ;;  %v1068_v11 = vmul.f32 %v3063_v34, %v1050_v9  ;;  %v1070_v39 = vmul.f32 %v3069_v38, %v1050_v9 }
 0x9cf   :  { %v1072_v5 = vmul.f32 %v3075_v22, %v1050_v9  ;;  %v1074_v13 = vmul.f32 %v3081_v47, %v1050_v9  ;;  %v1076_v2 = vmul.f32 %v3087_v4, %v1050_v9  ;;  %v1078_v54 = vmul.f32 %v3093_v15, %v1050_v9 }
 0x9d0   :  { %v1079_v19 = vpack.c.bf16 %v1064_v51, %v2993_v25  ;;  %v1080_v56 = vpack.c.bf16 %v1066_v40, %v3001_v10  ;;  %v1081_v21 = vpack.c.bf16 %v1068_v11, %v3009_v41  ;;  %v1082_v1 = vpack.c.bf16 %v1070_v39, %v3017_v49 }
 0x9d1   :  { %v1083_v52 = vpack.c.bf16 %v1072_v5, %v3025_v59  ;;  %v1084_v35 = vpack.c.bf16 %v1074_v13, %v3033_v43  ;;  %v1085_v62 = vpack.c.bf16 %v1076_v2, %v1075_v63  ;;  %v1086_v60 = vpack.c.bf16 %v1078_v54, %v1077_v7 }
 0x9d3   :  { %v1042_v53 = vpop.f32.mrf.mxu1 }
 0x9d4   :  { %v1061_v9 = vadd.f32 %v2132_v36, %v1042_v53 }
 0x9db   :  { %v1044_v6 = vpop.f32.mrf.mxu1 }
 0x9dc   :  { %v1062_v25 = vadd.f32 %v2132_v36, %v1044_v6 }
 0x9de   :  { %v1388_v58 = vpack.c.bf16 %v1062_v25, %v1061_v9 }
 0x9e0   :  { %1420 = vmatpush.bf16.msrb.mxu1 %v1388_v58 }
 0xa28   :  { %v1092_v41 = vpop.permute.xlu2 %1091 }
 0xa38   :  { %v1090_v10 = vpop.permute.xlu1 %1089 }
 0xa39   :  { %1095 = vxpose.xlu0.b32.start [1/2] (short) (narrow) %v1090_v10, 64 }
 0xa41   :  { %1096 = vxpose.xlu0.b32.end [2/2] (short) (narrow) %v1092_v41, 64 }
 0xadd   :  { %v1111_v49 = vpop.trf.xlu0 }
 0xae5   :  { %v1112_v59 = vpop.trf.xlu0 }
 0xae6   :  { %v1127_v2 = vpack.c.bf16 %v1112_v59, %v1111_v49 }
 0xaed   :  { %v1113_v51 = vpop.trf.xlu0 }
 0xaf5   :  { %v1114_v43 = vpop.trf.xlu0 }
 0xaf6   :  { %v1128_v13 = vpack.c.bf16 %v1114_v43, %v1113_v51 }
 0xafd   :  { %v1115_v63 = vpop.trf.xlu0 }
 0xb05   :  { %v1116_v7 = vpop.trf.xlu0 }
 0xb06   :  { %v1129_v5 = vpack.c.bf16 %v1116_v7, %v1115_v63 }
 0xb0d   :  { %v1117_v40 = vpop.trf.xlu0 }
 0xb15   :  { %v1118_v11 = vpop.trf.xlu0 }
 0xb16   :  { %v1130_v39 = vpack.c.bf16 %v1118_v11, %v1117_v40 }
 0xb18   :  { %1159 = vmatpush.bf16.msrb.mxu0 %v1130_v39 }
 0xb1c   :  { %1160 = vmatpush.bf16.msrb.mxu0 %v1129_v5 }
 0xb20   :  { %1161 = vmatpush.bf16.msrb.mxu0 %v1128_v13 }
 0xb24   :  { %1162 = vmatpush.bf16.msrb.mxu0 %v1127_v2 }
 0xb27   :  { %1952 = vmatmul.msk.bf16.vlgmr.msrb.gmra.mxu0 %vm106_vm0, %v1079_v19 }
 0xb37   :  { %1953 = vmatmul.msk.bf16.gmra.mxu0 %vm106_vm0, %v1080_v56 }
 0xb47   :  { %1954 = vmatmul.msk.bf16.gmra.mxu0 %vm106_vm0, %v1081_v21 }
 0xb57   :  { %1955 = vmatmul.msk.bf16.gmra.mxu0 %vm106_vm0, %v1082_v1 }
 0xb67   :  { %1956 = vmatmul.msk.bf16.gmra.mxu0 %vm106_vm0, %v1083_v52 }
 0xb77   :  { %1957 = vmatmul.msk.bf16.gmra.mxu0 %vm106_vm0, %v1084_v35 }
 0xb87   :  { %1958 = vmatmul.msk.bf16.gmra.mxu0 %vm106_vm0, %v1085_v62 }
 0xb97   :  { %1959 = vmatmul.msk.bf16.gmra.mxu0 %vm106_vm0, %v1086_v60 }
 0xba4   :  { %v1164_v54 = vpop.f32.mrf.mxu0 }
 0xba5   :  { %v1165_v53 = vadd.f32 %v1164_v54, %v2560_v55 }
 0xba7   :  { %v1204_v36 = vsel %vm359_vm1, %v1165_v53, -inf }
 0xba8   :  { %1205 = vmax.xlane.f32.xlu1 %v1204_v36 }
 0xbac   :  { %v1166_v19 = vpop.f32.mrf.mxu0 }
 0xbad   :  { %v1167_v56 = vadd.f32 %v1166_v19, %v2564_v61 }
 0xbaf   :  { %v1207_v21 = vsel %vm359_vm1, %v1167_v56, -inf }
 0xbb0   :  { %1208 = vmax.xlane.f32.xlu2 %v1207_v21 }
 0xbb4   :  { %v1169_v1 = vpop.f32.mrf.mxu0 }
 0xbb5   :  { %v1170_v52 = vadd.f32 %v1169_v1, %v2568_v3 }
 0xbb7   :  { %v1210_v35 = vsel %vm359_vm1, %v1170_v52, -inf }
 0xbb8   :  { %1211 = vmax.xlane.f32.xlu0 %v1210_v35 }
 0xbbc   :  { %v1171_v62 = vpop.f32.mrf.mxu0 }
 0xbbd   :  { %v1172_v60 = vadd.f32 %v1171_v62, %v2572_v8 }
 0xbbf   :  { %v1213_v55 = vsel %vm359_vm1, %v1172_v60, -inf }
 0xbc0   :  { %1214 = vmax.xlane.f32.xlu1 %v1213_v55 }
 0xbc4   :  { %v1174_v6 = vpop.f32.mrf.mxu0 }
 0xbc5   :  { %v1175_v9 = vadd.f32 %v1174_v6, %v2579_v12 }
 0xbc7   :  { %v1216_v61 = vsel %vm359_vm1, %v1175_v9, -inf }
 0xbc8   :  { %1217 = vmax.xlane.f32.xlu2 %v1216_v61 }
 0xbcc   :  { %v1176_v25 = vpop.f32.mrf.mxu0 }
 0xbcd   :  { %v1177_v58 = vadd.f32 %v1176_v25, %v2586_v16 }
 0xbcf   :  { %v1219_v3 = vsel %vm359_vm1, %v1177_v58, -inf }
 0xbd0   :  { %1220 = vmax.xlane.f32.xlu1 %v1219_v3 }
 0xbd4   :  { %v1179_v10 = vpop.f32.mrf.mxu0 }
 0xbd5   :  { %v3126_v41 = vadd.f32 %v1179_v10, %v2593_v20 }
 0xbd7   :  { %v1222_v8 = vsel %vm359_vm1, %v3126_v41, -inf }
 0xbd8   :  { %1223 = vmax.xlane.f32.xlu2 %v1222_v8 }
 0xbdc   :  { %v1181_v49 = vpop.f32.mrf.mxu0 }
 0xbdd   :  { %v3131_v12 = vadd.f32 %v1181_v49, %v2600_v24 }
 0xbdf   :  { %v1225_v59 = vsel %vm359_vm1, %v3131_v12, -inf }
 0xbe0   :  { %1226 = vmax.xlane.f32.xlu1 %v1225_v59 }
 0xbe4   :  { %v1184_v16 = vpop.f32.mrf.mxu0 }
 0xbe5   :  { %v3140_v24 = vadd.f32 %v1184_v16, %v2607_v28 }
 0xbec   :  { %v1186_v20 = vpop.f32.mrf.mxu0 }
 0xbed   :  { %v3149_v21 = vadd.f32 %v1186_v20, %v2614_v32 }
 0xbef   :  { %v1231_v62 = vsel %vm359_vm1, %v3149_v21, -inf }
 0xc1b   :  { %v1206_v51 = vpop.xlane.xlu1 %1205 }
 0xc1c   :  { %v1252_v43 = vsub.f32 %v1165_v53, %v1206_v51  ;;  %v1189_v53 = vpop.f32.mrf.mxu0 }
 0xc1d   :  { %v3158_v61 = vadd.f32 %v1189_v53, %v2620_v42 }
 0xc1e   :  { %v1268_v63 = vmul.f32 1.442695, %v1252_v43 }
 0xc1f   :  { %v1234_v10 = vsel %vm359_vm1, %v3158_v61, -inf }
 0xc20   :  { %2216 = vpow2.f32 %v1268_v63 }
 0xc23   :  { %v1209_v7 = vpop.xlane.xlu2 %1208 }
 0xc24   :  { %v1253_v40 = vsub.f32 %v1167_v56, %v1209_v7  ;;  %v1228_v56 = vsel %vm359_vm1, %v3140_v24, -inf  ;;  %v1191_v6 = vpop.f32.mrf.mxu0 }
 0xc25   :  { %v3167_v59 = vadd.f32 %v1191_v6, %v2626_v45 }
 0xc26   :  { %v3135_v11 = vpop.eup %2216  ;;  %v1270_v39 = vmul.f32 1.442695, %v1253_v40 }
 0xc27   :  { %v1300_v5 = vsel %vm359_vm1, %v3135_v11, 0.0  ;;  %v1237_v63 = vsel %vm359_vm1, %v3167_v59, -inf }
 0xc28   :  { %2218 = vpow2.f32 %v1270_v39  ;;  %1301 = vadd.xlane.f32.xlu2 %v1300_v5 }
 0xc2b   :  { %v1212_v13 = vpop.xlane.xlu0 %1211 }
 0xc2c   :  { %v1254_v2 = vsub.f32 %v1170_v52, %v1212_v13  ;;  %v1194_v49 = vpop.f32.mrf.mxu0 }
 0xc2d   :  { %v3176_v7 = vadd.f32 %v1194_v49, %v2624_v44 }
 0xc2e   :  { %v3142_v54 = vpop.eup %2218  ;;  %v1272_v36 = vmul.f32 1.442695, %v1254_v2 }
 0xc2f   :  { %v1303_v19 = vsel %vm359_vm1, %v3142_v54, 0.0  ;;  %v1240_v5 = vsel %vm359_vm1, %v3176_v7, -inf }
 0xc30   :  { %2220 = vpow2.f32 %v1272_v36  ;;  %1304 = vadd.xlane.f32.xlu1 %v1303_v19  ;;  %1229 = vmax.xlane.f32.xlu2 %v1228_v56 }
 0xc33   :  { %v1215_v28 = vpop.xlane.xlu1 %1214 }
 0xc34   :  { %v1255_v1 = vsub.f32 %v1172_v60, %v1215_v28  ;;  %v1196_v45 = vpop.f32.mrf.mxu0 }
 0xc35   :  { %v3186_v2 = vadd.f32 %v1196_v45, %v2668_v27 }
 0xc36   :  { %v3151_v35 = vpop.eup %2220  ;;  %v1274_v52 = vmul.f32 1.442695, %v1255_v1 }
 0xc37   :  { %v1306_v55 = vsel %vm359_vm1, %v3151_v35, 0.0  ;;  %v1243_v28 = vsel %vm359_vm1, %v3186_v2, -inf }
 0xc38   :  { %2222 = vpow2.f32 %v1274_v52  ;;  %1232 = vmax.xlane.f32.xlu1 %v1231_v62  ;;  %1307 = vadd.xlane.f32.xlu2 %v1306_v55 }
 0xc3b   :  { %v1218_v32 = vpop.xlane.xlu2 %1217 }
 0xc3c   :  { %v1256_v25 = vsub.f32 %v1175_v9, %v1218_v32 }
 0xc3e   :  { %v3160_v3 = vpop.eup %2222  ;;  %v1276_v60 = vmul.f32 1.442695, %v1256_v25 }
 0xc3f   :  { %v1309_v8 = vsel %vm359_vm1, %v3160_v3, 0.0 }
 0xc40   :  { %2224 = vpow2.f32 %v1276_v60  ;;  %1235 = vmax.xlane.f32.xlu2 %v1234_v10  ;;  %1310 = vadd.xlane.f32.xlu1 %v1309_v8 }
 0xc43   :  { %v1221_v42 = vpop.xlane.xlu1 %1220 }
 0xc44   :  { %v1257_v16 = vsub.f32 %v1177_v58, %v1221_v42 }
 0xc46   :  { %v3169_v51 = vpop.eup %2224  ;;  %v1278_v9 = vmul.f32 1.442695, %v1257_v16 }
 0xc47   :  { %v1312_v43 = vsel %vm359_vm1, %v3169_v51, 0.0 }
 0xc48   :  { %2226 = vpow2.f32 %v1278_v9  ;;  %1313 = vadd.xlane.f32.xlu2 %v1312_v43  ;;  %1238 = vmax.xlane.f32.xlu1 %v1237_v63 }
 0xc4b   :  { %v1224_v20 = vpop.xlane.xlu2 %1223 }
 0xc4c   :  { %v1258_v40 = vsub.f32 %v3126_v41, %v1224_v20  ;;  %v1199_v41 = vpop.f32.mrf.mxu0 }
 0xc4d   :  { %v3196_v1 = vadd.f32 %v1199_v41, %v2700_v57 }
 0xc4e   :  { %v3179_v58 = vpop.eup %2226  ;;  %v1280_v39 = vmul.f32 1.442695, %v1258_v40 }
 0xc4f   :  { %v1315_v13 = vsel %vm359_vm1, %v3179_v58, 0.0 }
 0xc50   :  { %2228 = vpow2.f32 %v1280_v39  ;;  %1241 = vmax.xlane.f32.xlu2 %v1240_v5  ;;  %1316 = vadd.xlane.f32.xlu1 %v1315_v13 }
 0xc53   :  { %v1227_v44 = vpop.xlane.xlu1 %1226 }
 0xc54   :  { %v1259_v53 = vsub.f32 %v3131_v12, %v1227_v44  ;;  %v1246_v12 = vsel %vm359_vm1, %v3196_v1, -inf  ;;  %v1201_v62 = vpop.f32.mrf.mxu0 }
 0xc55   :  { %v3205_v55 = vadd.f32 %v1201_v62, %v2706_v17 }
 0xc56   :  { %v3189_v36 = vpop.eup %2228  ;;  %v1282_v19 = vmul.f32 1.442695, %v1259_v53 }
 0xc57   :  { %v1318_v56 = vsel %vm359_vm1, %v3189_v36, 0.0  ;;  %v1249_v6 = vsel %vm359_vm1, %v3205_v55, -inf }
 0xc58   :  { %2230 = vpow2.f32 %v1282_v19  ;;  %1319 = vadd.xlane.f32.xlu2 %v1318_v56  ;;  %1244 = vmax.xlane.f32.xlu1 %v1243_v28 }
 0xc5e   :  { %v3198_v27 = vpop.eup %2230 }
 0xc5f   :  { %v1321_v52 = vsel %vm359_vm1, %v3198_v27, 0.0 }
 0xc60   :  { %1247 = vmax.xlane.f32.xlu2 %v1246_v12  ;;  %1322 = vadd.xlane.f32.xlu1 %v1321_v52 }
 0xc68   :  { %1250 = vmax.xlane.f32.xlu1 %v1249_v6 }
 0xc9b   :  { %v1302_v57 = vpop.xlane.xlu2 %1301 }
 0xc9c   :  { %2232 = vrcp.f32 %v1302_v57 }
 0xca2   :  { %v2233_v8 = vpop.eup %2232 }
 0xca3   :  { %v1230_v32 = vpop.xlane.xlu2 %1229  ;;  %v1305_v25 = vpop.xlane.xlu1 %1304  ;;  %v1364_v42 = vmul.f32 %v2233_v8, %v3135_v11 }
 0xca4   :  { %v1260_v60 = vsub.f32 %v3140_v24, %v1230_v32  ;;  %2234 = vrcp.f32 %v1305_v25 }
 0xca6   :  { %v1284_v10 = vmul.f32 1.442695, %v1260_v60 }
 0xca8   :  { %2236 = vpow2.f32 %v1284_v10 }
 0xcaa   :  { %v2235_v49 = vpop.eup %2234 }
 0xcab   :  { %v1365_v17 = vmul.f32 %v2235_v49, %v3142_v54  ;;  %v1308_v16 = vpop.xlane.xlu2 %1307  ;;  %v1233_v9 = vpop.xlane.xlu1 %1232 }
 0xcac   :  { %v1261_v43 = vsub.f32 %v3149_v21, %v1233_v9 }
 0xcad   :  { %v1380_v63 = vpack.c.bf16 %v1365_v17, %v1364_v42 }
 0xcae   :  { %v3213_v20 = vpop.eup %2236  ;;  %v1286_v45 = vmul.f32 1.442695, %v1261_v43 }
 0xcaf   :  { %1960 = vmatmul.msk.bf16.vlgmr.msrb.gmra.mxu1 %vm359_vm1, %v1380_v63  ;;  %v1324_v24 = vsel %vm359_vm1, %v3213_v20, 0.0 }
 0xcb0   :  { %2238 = vpow2.f32 %v1286_v45  ;;  %1325 = vadd.xlane.f32.xlu2 %v1324_v24 }
 0xcb1   :  { %2240 = vrcp.f32 %v1308_v16 }
 0xcb3   :  { %v1236_v40 = vpop.xlane.xlu2 %1235  ;;  %v1311_v11 = vpop.xlane.xlu1 %1310 }
 0xcb4   :  { %v1262_v54 = vsub.f32 %v3158_v61, %v1236_v40  ;;  %2242 = vrcp.f32 %v1311_v11 }
 0xcb6   :  { %v3219_v39 = vpop.eup %2238  ;;  %v1288_v21 = vmul.f32 1.442695, %v1262_v54 }
 0xcb7   :  { %v1327_v5 = vsel %vm359_vm1, %v3219_v39, 0.0  ;;  %v2241_v13 = vpop.eup %2240 }
 0xcb8   :  { %2244 = vpow2.f32 %v1288_v21  ;;  %1328 = vadd.xlane.f32.xlu1 %v1327_v5  ;;  %v1366_v19 = vmul.f32 %v2241_v13, %v3151_v35 }
 0xcba   :  { %v2243_v44 = vpop.eup %2242 }
 0xcbb   :  { %v1314_v53 = vpop.xlane.xlu2 %1313  ;;  %v1239_v41 = vpop.xlane.xlu1 %1238  ;;  %v1367_v56 = vmul.f32 %v2243_v44, %v3160_v3 }
 0xcbc   :  { %v1263_v28 = vsub.f32 %v3167_v59, %v1239_v41 }
 0xcbd   :  { %v1381_v61 = vpack.c.bf16 %v1367_v56, %v1366_v19 }
 0xcbe   :  { %v3226_v12 = vpop.eup %2244  ;;  %v1290_v52 = vmul.f32 1.442695, %v1263_v28 }
 0xcbf   :  { %1961 = vmatmul.msk.bf16.gmra.mxu1 %vm359_vm1, %v1381_v61  ;;  %v1330_v62 = vsel %vm359_vm1, %v3226_v12, 0.0 }
 0xcc0   :  { %2246 = vpow2.f32 %v1290_v52  ;;  %1331 = vadd.xlane.f32.xlu2 %v1330_v62 }
 0xcc1   :  { %2248 = vrcp.f32 %v1314_v53 }
 0xcc3   :  { %v1242_v6 = vpop.xlane.xlu2 %1241  ;;  %v1317_v57 = vpop.xlane.xlu1 %1316 }
 0xcc4   :  { %v1264_v35 = vsub.f32 %v3176_v7, %v1242_v6  ;;  %2250 = vrcp.f32 %v1317_v57 }
 0xcc6   :  { %v3232_v3 = vpop.eup %2246  ;;  %v1292_v59 = vmul.f32 1.442695, %v1264_v35 }
 0xcc7   :  { %v1333_v32 = vsel %vm359_vm1, %v3232_v3, 0.0  ;;  %v2249_v25 = vpop.eup %2248 }
 0xcc8   :  { %2252 = vpow2.f32 %v1292_v59  ;;  %1334 = vadd.xlane.f32.xlu1 %v1333_v32  ;;  %v1368_v49 = vmul.f32 %v2249_v25, %v3169_v51 }
 0xcca   :  { %v2251_v60 = vpop.eup %2250 }
 0xccb   :  { %v1320_v10 = vpop.xlane.xlu2 %1319  ;;  %v1245_v8 = vpop.xlane.xlu1 %1244  ;;  %v1369_v42 = vmul.f32 %v2251_v60, %v3179_v58 }
 0xccc   :  { %v1265_v17 = vsub.f32 %v3186_v2, %v1245_v8 }
 0xccd   :  { %v1382_v7 = vpack.c.bf16 %v1369_v42, %v1368_v49 }
 0xcce   :  { %v3239_v16 = vpop.eup %2252  ;;  %v1294_v9 = vmul.f32 1.442695, %v1265_v17 }
 0xccf   :  { %1962 = vmatmul.msk.bf16.gmra.mxu1 %vm359_vm1, %v1382_v7  ;;  %v1336_v43 = vsel %vm359_vm1, %v3239_v16, 0.0 }
 0xcd0   :  { %2254 = vpow2.f32 %v1294_v9  ;;  %1337 = vadd.xlane.f32.xlu2 %v1336_v43 }
 0xcd1   :  { %2256 = vrcp.f32 %v1320_v10 }
 0xcd3   :  { %v1248_v63 = vpop.xlane.xlu2 %1247  ;;  %v1323_v45 = vpop.xlane.xlu1 %1322 }
 0xcd4   :  { %v1266_v51 = vsub.f32 %v3196_v1, %v1248_v63  ;;  %2258 = vrcp.f32 %v1323_v45 }
 0xcd6   :  { %v3245_v58 = vpop.eup %2254  ;;  %v1296_v2 = vmul.f32 1.442695, %v1266_v51 }
 0xcd7   :  { %v1339_v24 = vsel %vm359_vm1, %v3245_v58, 0.0  ;;  %v2257_v40 = vpop.eup %2256 }
 0xcd8   :  { %2260 = vpow2.f32 %v1296_v2  ;;  %1340 = vadd.xlane.f32.xlu1 %v1339_v24  ;;  %v1370_v21 = vmul.f32 %v2257_v40, %v3189_v36  ;;  %v2100_v2 = vld [vmem:[%s3424_s1 + $0xd8] sm:$0xf0] }
 0xcda   :  { %v2259_v11 = vpop.eup %2258 }
 0xcdb   :  { %v1251_v54 = vpop.xlane.xlu1 %1250  ;;  %v1371_v5 = vmul.f32 %v2259_v11, %v3198_v27 }
 0xcdc   :  { %v1267_v13 = vsub.f32 %v3205_v55, %v1251_v54 }
 0xcdd   :  { %v1383_v44 = vpack.c.bf16 %v1371_v5, %v1370_v21 }
 0xcde   :  { %v3252_v1 = vpop.eup %2260  ;;  %v1298_v53 = vmul.f32 1.442695, %v1267_v13 }
 0xcdf   :  { %1963 = vmatmul.msk.bf16.gmra.mxu1 %vm359_vm1, %v1383_v44  ;;  %v1342_v41 = vsel %vm359_vm1, %v3252_v1, 0.0 }
 0xce0   :  { %2262 = vpow2.f32 %v1298_v53  ;;  %1343 = vadd.xlane.f32.xlu2 %v1342_v41 }
 0xce6   :  { %v3257_v19 = vpop.eup %2262 }
 0xce7   :  { %v1345_v36 = vsel %vm359_vm1, %v3257_v19, 0.0 }
 0xce8   :  { %1346 = vadd.xlane.f32.xlu1 %v1345_v36 }
 0xd23   :  { %v1326_v27 = vpop.xlane.xlu2 %1325 }
 0xd24   :  { %2264 = vrcp.f32 %v1326_v27 }
 0xd2a   :  { %v2265_v28 = vpop.eup %2264 }
 0xd2b   :  { %v1329_v55 = vpop.xlane.xlu1 %1328  ;;  %v1372_v52 = vmul.f32 %v2265_v28, %v3213_v20 }
 0xd2c   :  { %2266 = vrcp.f32 %v1329_v55  ;;  %v1422_v56 = vpop.f32.mrf.mxu1 }
 0xd2d   :  { %v1462_v59 = vmul.f32 %v2990_v14, %v1422_v56 }
 0xd2f   :  { %v1478_v10 = vsel %vm106_vm0, %v1462_v59, 0.0 }
 0xd32   :  { %v2267_v61 = vpop.eup %2266 }
 0xd33   :  { %v1373_v62 = vmul.f32 %v2267_v61, %v3219_v39  ;;  %v1332_v35 = vpop.xlane.xlu2 %1331 }
 0xd34   :  { %v1424_v6 = vpop.f32.mrf.mxu1  ;;  %2268 = vrcp.f32 %v1332_v35 }
 0xd35   :  { %v1384_v57 = vpack.c.bf16 %v1373_v62, %v1372_v52  ;;  %v1463_v42 = vmul.f32 %v3051_v48, %v1424_v6  ;;  %v1990_v48 = vld [vmem:[%s3424_s1 + $0xec] sm:$0xf] }
 0xd37   :  { %1964 = vmatmul.msk.bf16.gmra.mxu1 %vm359_vm1, %v1384_v57  ;;  %v1493_v63 = vsel %vm106_vm0, %v1463_v42, 0.0 }
 0xd3a   :  { %v2269_v20 = vpop.eup %2268 }
 0xd3b   :  { %v1335_v32 = vpop.xlane.xlu1 %1334  ;;  %v1374_v17 = vmul.f32 %v2269_v20, %v3226_v12  ;;  %v2101_v12 = vld [vmem:[%s3424_s1 + $0xf8] sm:$0xf0] }
 0xd3c   :  { %2270 = vrcp.f32 %v1335_v32  ;;  %v1427_v25 = vpop.f32.mrf.mxu1  ;;  %v1982_v32 = vld [vmem:[%s3424_s1 + $0xac] sm:$0xf] }
 0xd3d   :  { %v1464_v60 = vmul.f32 %v2998_v31, %v1427_v25 }
 0xd3f   :  { %v1479_v8 = vsel %vm106_vm0, %v1464_v60, 0.0 }
 0xd40   :  { %v1480_v49 = vadd.f32 %v1479_v8, %v1478_v10 }
 0xd42   :  { %v2271_v39 = vpop.eup %2270 }
 0xd43   :  { %v1375_v7 = vmul.f32 %v2271_v39, %v3232_v3  ;;  %v1338_v31 = vpop.xlane.xlu2 %1337  ;;  %v1991_v3 = vor.u32 %v2101_v12, %v1990_v48 }
 0xd44   :  { %v1429_v9 = vpop.f32.mrf.mxu1  ;;  %2272 = vrcp.f32 %v1338_v31 }
 0xd45   :  { %v1465_v14 = vmul.f32 %v3057_v0, %v1429_v9  ;;  %v1385_v43 = vpack.c.bf16 %v1375_v7, %v1374_v17  ;;  %v1986_v0 = vld [vmem:[%s3424_s1 + $0xcc] sm:$0xf]  ;;  %1550 = vmatpush.bf16.msrb.mxu3 %v1991_v3 }
 0xd46   :  { %v1987_v40 = vor.u32 %v2100_v2, %v1986_v0 }
 0xd47   :  { %v1494_v45 = vsel %vm106_vm0, %v1465_v14, 0.0  ;;  %1965 = vmatmul.msk.bf16.gmra.mxu1 %vm359_vm1, %v1385_v43 }
 0xd48   :  { %v1495_v51 = vadd.f32 %v1494_v45, %v1493_v63 }
 0xd49   :  { %1551 = vmatpush.bf16.msrb.mxu3 %v1987_v40 }
 0xd4a   :  { %v2273_v5 = vpop.eup %2272 }
 0xd4b   :  { %v1341_v24 = vpop.xlane.xlu1 %1340  ;;  %v1376_v53 = vmul.f32 %v2273_v5, %v3239_v16 }
 0xd4c   :  { %2274 = vrcp.f32 %v1341_v24  ;;  %v1432_v11 = vpop.f32.mrf.mxu1 }
 0xd4d   :  { %v1466_v54 = vmul.f32 %v3006_v30, %v1432_v11 }
 0xd4f   :  { %v1481_v21 = vsel %vm106_vm0, %v1466_v54, 0.0 }
 0xd50   :  { %v1482_v13 = vadd.f32 %v1481_v21, %v1480_v49 }
 0xd52   :  { %v2275_v44 = vpop.eup %2274 }
 0xd53   :  { %v1377_v41 = vmul.f32 %v2275_v44, %v3245_v58  ;;  %v1344_v56 = vpop.xlane.xlu2 %1343 }
 0xd54   :  { %v1434_v36 = vpop.f32.mrf.mxu1  ;;  %2276 = vrcp.f32 %v1344_v56 }
 0xd55   :  { %v1467_v27 = vmul.f32 %v3063_v34, %v1434_v36  ;;  %v1386_v55 = vpack.c.bf16 %v1377_v41, %v1376_v53  ;;  %v2133_v41 = vld [vmem:[%s3425_s3 + $0x20] ss:$0 sm:$0xff] }
 0xd57   :  { %v1496_v28 = vsel %vm106_vm0, %v1467_v27, 0.0  ;;  %1966 = vmatmul.msk.bf16.gmra.mxu1 %vm359_vm1, %v1386_v55 }
 0xd58   :  { %v1497_v30 = vadd.f32 %v1496_v28, %v1495_v51 }
 0xd5a   :  { %v2277_v6 = vpop.eup %2276 }
 0xd5b   :  { %v1347_v61 = vpop.xlane.xlu1 %1346  ;;  %v1378_v34 = vmul.f32 %v2277_v6, %v3252_v1  ;;  %v1978_v1 = vld [vmem:[%s3424_s1 + $0x8c] sm:$0xf] }
 0xd5c   :  { %2278 = vrcp.f32 %v1347_v61  ;;  %v1437_v52 = vpop.f32.mrf.mxu1 }
 0xd5d   :  { %v1468_v62 = vmul.f32 %v3014_v26, %v1437_v52  ;;  %v2099_v26 = vld [vmem:[%s3424_s1 + $0xb8] sm:$0xf0] }
 0xd5e   :  { %v1983_v25 = vor.u32 %v2099_v26, %v1982_v32  ;;  %v2105_v32 = vld [vmem:[%s3424_s1 + $0xf4] sm:$0xf0] }
 0xd5f   :  { %v1483_v16 = vsel %vm106_vm0, %v1468_v62, 0.0 }
 0xd60   :  { %v1484_v58 = vadd.f32 %v1483_v16, %v1482_v13  ;;  %1552 = vmatpush.bf16.msrb.mxu3 %v1983_v25  ;;  %v2011_v25 = vld [vmem:[%s3424_s1 + $0xc8] sm:$0xf] }
 0xd62   :  { %v2279_v57 = vpop.eup %2278 }
 0xd63   :  { %v1379_v35 = vmul.f32 %v2279_v57, %v3257_v19  ;;  %v2098_v19 = vld [vmem:[%s3424_s1 + $0x98] sm:$0xf0] }
 0xd64   :  { %v1439_v60 = vpop.f32.mrf.mxu1  ;;  %v1979_v8 = vor.u32 %v2098_v19, %v1978_v1  ;;  %v2007_v1 = vld [vmem:[%s3424_s1 + $0xa8] sm:$0xf]  ;;  %v2103_v19 = vld [vmem:[%s3424_s1 + $0xb4] sm:$0xf0] }
 0xd65   :  { %v1387_v59 = vpack.c.bf16 %v1379_v35, %v1378_v34  ;;  %v1469_v7 = vmul.f32 %v3069_v38, %v1439_v60  ;;  %v2104_v60 = vld [vmem:[%s3424_s1 + $0xd4] sm:$0xf0] }
 0xd66   :  { %1553 = vmatpush.bf16.msrb.mxu3 %v1979_v8 }
 0xd67   :  { %1967 = vmatmul.msk.bf16.gmra.mxu1 %vm359_vm1, %v1387_v59  ;;  %v1498_v63 = vsel %vm106_vm0, %v1469_v7, 0.0 }
 0xd68   :  { %v1499_v38 = vadd.f32 %v1498_v63, %v1497_v30  ;;  %v2112_v63 = vld [vmem:[%s3427_s2 + $0x70] sm:$0xff] }
 0xdb4   :  { %v1442_v10 = vpop.f32.mrf.mxu1 }
 0xdb5   :  { %v1470_v9 = vmul.f32 %v3022_v46, %v1442_v10  ;;  %v2012_v10 = vor.u32 %v2104_v60, %v2011_v25 }
 0xdb7   :  { %v1485_v51 = vsel %vm106_vm0, %v1470_v9, 0.0  ;;  %v2113_v9 = vld [vmem:[%s3427_s2 + $0x78] sm:$0xff] }
 0xdb8   :  { %v1486_v2 = vadd.f32 %v1485_v51, %v1484_v58  ;;  %1736 = vmatpush.bf16.msra.mxu3 %v2113_v9 }
 0xdbc   :  { %v1444_v20 = vpop.f32.mrf.mxu1  ;;  %1737 = vmatpush.bf16.msra.mxu3 %v2112_v63  ;;  %v2140_v63 = vld [vmem:[%s3425_s3 + $0x11] ss:$0 sm:$0xff] }
 0xdbd   :  { %v1471_v14 = vmul.f32 %v3075_v22, %v1444_v20  ;;  %v2008_v20 = vor.u32 %v2103_v19, %v2007_v1 }
 0xdbf   :  { %v1500_v48 = vsel %vm106_vm0, %v1471_v14, 0.0 }
 0xdc0   :  { %v1501_v24 = vadd.f32 %v1500_v48, %v1499_v38  ;;  %v2111_v48 = vld [vmem:[%s3427_s2 + $0x68] sm:$0xff]  ;;  %v2110_v38 = vld [vmem:[%s3427_s2 + $0x60] sm:$0xff] }
 0xdc1   :  { %1738 = vmatpush.bf16.msra.mxu3 %v2111_v48  ;;  %v2141_v48 = vld [vmem:[%s3425_s3 + $0x12] ss:$0 sm:$0xff] }
 0xdc4   :  { %v1447_v49 = vpop.f32.mrf.mxu1 }
 0xdc5   :  { %v1472_v31 = vmul.f32 %v3030_v33, %v1447_v49  ;;  %1739 = vmatpush.bf16.msra.mxu3 %v2110_v38 }
 0xdc7   :  { %v1487_v46 = vsel %vm106_vm0, %v1472_v31, 0.0 }
 0xdc8   :  { %v1488_v40 = vadd.f32 %v1487_v46, %v1486_v2 }
 0xdcc   :  { %v1449_v39 = vpop.f32.mrf.mxu1 }
 0xdcd   :  { %v1473_v45 = vmul.f32 %v3081_v47, %v1449_v39 }
 0xdcf   :  { %v1502_v22 = vsel %vm106_vm0, %v1473_v45, 0.0 }
 0xdd0   :  { %v1503_v11 = vadd.f32 %v1502_v22, %v1501_v24 }
 0xdd4   :  { %v1452_v42 = vpop.f32.mrf.mxu1 }
 0xdd5   :  { %v1474_v12 = vmul.f32 %v3038_v50, %v1452_v42  ;;  %v2003_v42 = vld [vmem:[%s3424_s1 + $0x88] sm:$0xf] }
 0xdd7   :  { %v1489_v33 = vsel %vm106_vm0, %v1474_v12, 0.0 }
 0xdd8   :  { %v1490_v21 = vadd.f32 %v1489_v33, %v1488_v40 }
 0xddc   :  { %v1454_v17 = vpop.f32.mrf.mxu1 }
 0xddd   :  { %v1475_v0 = vmul.f32 %v3087_v4, %v1454_v17  ;;  %v2102_v17 = vld [vmem:[%s3424_s1 + $0x94] sm:$0xf0] }
 0xdde   :  { %v2004_v7 = vor.u32 %v2102_v17, %v2003_v42 }
 0xddf   :  { %v1504_v47 = vsel %vm106_vm0, %v1475_v0, 0.0 }
 0xde0   :  { %v1505_v5 = vadd.f32 %v1504_v47, %v1503_v11  ;;  %v2134_v11 = vld [vmem:[%s3425_s3 + $0x23] ss:$0 sm:$0xff] }
 0xde4   :  { %v1457_v43 = vpop.f32.mrf.mxu1 }
 0xde5   :  { %v1476_v3 = vmul.f32 %v3044_v37, %v1457_v43 }
 0xde7   :  { %v1491_v50 = vsel %vm106_vm0, %v1476_v3, 0.0 }
 0xde8   :  { %v1492_v44 = vadd.f32 %v1491_v50, %v1490_v21  ;;  %v2135_v21 = vld [vmem:[%s3425_s3 + $0x24] ss:$0 sm:$0xff] }
 0xdec   :  { %v1459_v54 = vpop.f32.mrf.mxu1 }
 0xded   :  { %v1477_v4 = vmul.f32 %v3093_v15, %v1459_v54 }
 0xdef   :  { %v1506_v13 = vsel %vm106_vm0, %v1477_v4, 0.0 }
 0xdf0   :  { %v1507_v53 = vadd.f32 %v1506_v13, %v1505_v5 }
 0xdf2   :  { %v1508_v37 = vpack.c.bf16 %v1507_v53, %v1492_v44 }
 0xdf4   :  { %1992 = vmatmul.msk.bf16.vlgmr.msrb.gmra.mxu3 %vm106_vm0, %v1508_v37 }
 0xe77   :  { %v1555_v36 = vpop.f32.mrf.mxu3 }
 0xe78   :  { %v1556_v27 = vadd.f32 %v2133_v41, %v1555_v36  ;;  %v2109_v36 = vld [vmem:[%s3427_s2 + $0x58] sm:$0xff] }
 0xe79   :  { %1740 = vmatpush.bf16.msra.mxu3 %v2109_v36 }
 0xe7a   :  { %v1560_v55 = vadd.f32 %v1556_v27, %v2975_v29  ;;  %v2108_v27 = vld [vmem:[%s3427_s2 + $0x50] sm:$0xff] }
 0xe7c   :  { %v1564_v56 = vsel %vm106_vm0, %v1560_v55, 0.0 }
 0xe7d   :  { %1565 = vadd.xlane.f32.xlu2 %v1564_v56  ;;  %1741 = vmatpush.bf16.msra.mxu3 %v2108_v27  ;;  %v2106_v56 = vld [vmem:[%s3427_s2 + $0x40] sm:$0xff] }
 0xe7f   :  { %v1557_v15 = vpop.f32.mrf.mxu3 }
 0xe80   :  { %v1558_v28 = vadd.f32 %v2133_v41, %v1557_v15 }
 0xe82   :  { %v1561_v30 = vadd.f32 %v1558_v28, %v2977_v18  ;;  %v2015_v18 = vld [vmem:[%s3424_s1 + $0xe8] sm:$0xf]  ;;  %v2136_v28 = vld [vmem:[%s3425_s3 + $0x21] ss:$0 sm:$0xff] }
 0xe83   :  { %v2016_v26 = vor.u32 %v2105_v32, %v2015_v18 }
 0xe84   :  { %v1567_v61 = vsel %vm106_vm0, %v1561_v30, 0.0 }
 0xe85   :  { %1568 = vadd.xlane.f32.xlu1 %v1567_v61  ;;  %1656 = vmatpush.bf16.msra.mxu2 %v2016_v26 }
 0xe89   :  { %1657 = vmatpush.bf16.msra.mxu2 %v2012_v10 }
 0xe8d   :  { %1658 = vmatpush.bf16.msra.mxu2 %v2008_v20 }
 0xe91   :  { %1659 = vmatpush.bf16.msra.mxu2 %v2004_v7  ;;  %v2138_v7 = vld [vmem:[%s3425_s3 + $0x25] ss:$0 sm:$0xff] }
 0xef0   :  { %v1566_v52 = vpop.xlane.xlu2 %1565 }
 0xef1   :  { %v1570_v62 = vmul.f32 %v1566_v52, %v2825_v23 }
 0xef3   :  { %v1572_v16 = vsub.f32 %v1560_v55, %v1570_v62  ;;  %v2107_v55 = vld [vmem:[%s3427_s2 + $0x48] sm:$0xff] }
 0xef4   :  { %1742 = vmatpush.bf16.msra.mxu3 %v2107_v55 }
 0xef5   :  { %v1574_v6 = vmul.f32 %v1572_v16, %v1572_v16 }
 0xef7   :  { %v1576_v58 = vsel %vm106_vm0, %v1574_v6, 0.0 }
 0xef8   :  { %v1569_v57 = vpop.xlane.xlu1 %1568  ;;  %1577 = vadd.xlane.f32.xlu2 %v1576_v58  ;;  %1743 = vmatpush.bf16.msra.mxu3 %v2106_v56 }
 0xef9   :  { %v1571_v29 = vmul.f32 %v1569_v57, %v2825_v23  ;;  %v2137_v57 = vld [vmem:[%s3425_s3 + $0x22] ss:$0 sm:$0xff] }
 0xefb   :  { %v1573_v34 = vsub.f32 %v1561_v30, %v1571_v29 }
 0xefd   :  { %v1575_v35 = vmul.f32 %v1573_v34, %v1573_v34 }
 0xeff   :  { %v1579_v59 = vsel %vm106_vm0, %v1575_v35, 0.0 }
 0xf00   :  { %1580 = vadd.xlane.f32.xlu1 %v1579_v59 }
 0xf6b   :  { %v1578_v8 = vpop.xlane.xlu2 %1577 }
 0xf6c   :  { %v1582_v49 = vmul.f32 %v1578_v8, %v2825_v23 }
 0xf6e   :  { %v1584_v39 = vadd.f32 1e-05, %v1582_v49 }
 0xf70   :  { %2280 = vrsqrt.f32 %v1584_v39  ;;  %vm1592_vm1 = vweird.f32 %v1584_v39 }
 0xf73   :  { %v1581_v14 = vpop.xlane.xlu1 %1580 }
 0xf74   :  { %v1583_v43 = vmul.f32 %v1581_v14, %v2825_v23 }
 0xf76   :  { %v2281_v31 = vpop.eup %2280  ;;  %v1585_v45 = vadd.f32 1e-05, %v1583_v43 }
 0xf77   :  { %v1587_v51 = vmul.f32 %v2281_v31, %v1584_v39  ;;  %vm1593_vm15 = vweird.f32 %v2281_v31 }
 0xf78   :  { %2282 = vrsqrt.f32 %v1585_v45  ;;  %vm1594_vm2 = vmor %vm1592_vm1, %vm1593_vm15  ;;  %vm1602_vm4 = vweird.f32 %v1585_v45 }
 0xf79   :  { %v1588_v12 = vmul.f32 %v2281_v31, %v1587_v51 }
 0xf7b   :  { %v1589_v0 = vmul.f32 0.5, %v1588_v12 }
 0xf7d   :  { %v1590_v46 = vsub.f32 1.5, %v1589_v0 }
 0xf7e   :  { %v2283_v22 = vpop.eup %2282 }
 0xf7f   :  { %v1591_v3 = vmul.f32 %v2281_v31, %v1590_v46  ;;  %v1597_v2 = vmul.f32 %v2283_v22, %v1585_v45  ;;  %vm1603_vm3 = vweird.f32 %v2283_v22 }
 0xf80   :  { %vm1604_vm5 = vmor %vm1602_vm4, %vm1603_vm3 }
 0xf81   :  { %v1598_v24 = vmul.f32 %v2283_v22, %v1597_v2  ;;  %v1595_v33 = vsel %vm1594_vm2, %v2281_v31, %v1591_v3 }
 0xf82   :  { %v1606_v54 = vmul.f32 %v1595_v33, %v1572_v16 }
 0xf83   :  { %v1599_v47 = vmul.f32 0.5, %v1598_v24 }
 0xf84   :  { %v1609_v5 = vmul.f32 %v2134_v11, %v1606_v54 }
 0xf85   :  { %v1600_v40 = vsub.f32 1.5, %v1599_v47 }
 0xf86   :  { %v1612_v53 = vadd.f32 %v2135_v21, %v1609_v5 }
 0xf87   :  { %v1601_v50 = vmul.f32 %v2283_v22, %v1600_v40 }
 0xf89   :  { %v1605_v4 = vsel %vm1604_vm5, %v2283_v22, %v1601_v50 }
 0xf8a   :  { %v1607_v13 = vmul.f32 %v1605_v4, %v1573_v34 }
 0xf8c   :  { %v1610_v44 = vmul.f32 %v2134_v11, %v1607_v13 }
 0xf8e   :  { %v1613_v37 = vadd.f32 %v2135_v21, %v1610_v44 }
 0xf90   :  { %v1614_v41 = vpack.c.bf16 %v1613_v37, %v1612_v53 }
 0xf92   :  { %2017 = vmatmul.msk.bf16.vlgmr.msra.gmra.mxu2 %vm106_vm0, %v1614_v41 }
0x1015   :  { %v1661_v15 = vpop.f32.mrf.mxu2 }
0x1016   :  { %v1662_v30 = vadd.f32 %v2136_v28, %v1661_v15 }
0x1018   :  { %v1666_v62 = vmax.f32 %v1662_v30, 0.0 }
0x101d   :  { %v1663_v61 = vpop.f32.mrf.mxu2 }
0x101e   :  { %v1664_v52 = vadd.f32 %v2136_v28, %v1663_v61 }
0x1020   :  { %v1667_v16 = vmax.f32 %v1664_v52, 0.0 }
0x1022   :  { %v1668_v6 = vpack.c.bf16 %v1667_v16, %v1666_v62 }
0x1024   :  { %1744 = vmatmul.bf16.vlgmr.msra.gmra.mxu3 %v1668_v6 }
0x10a7   :  { %v1745_v58 = vpop.f32.mrf.mxu3 }
0x10af   :  { %v1746_v29 = vpop.f32.mrf.mxu3 }
0x10b0   :  { %v1747_v34 = vadd.f32 %v2137_v57, %v1746_v29 }
0x10b2   :  { %v1749_v35 = vadd.f32 %v1747_v34, %v1613_v37 }
0x10b4   :  { %v1752_v59 = vsel %vm106_vm0, %v1749_v35, 0.0 }
0x10b5   :  { %1753 = vadd.xlane.f32.xlu2 %v1752_v59 }
0x1128   :  { %v1754_v18 = vpop.xlane.xlu2 %1753 }
0x1129   :  { %v1755_v32 = vmul.f32 %v1754_v18, %v2825_v23 }
0x112b   :  { %v1756_v26 = vsub.f32 %v1749_v35, %v1755_v32 }
0x112d   :  { %v1757_v25 = vmul.f32 %v1756_v26, %v1756_v26 }
0x112f   :  { %v1758_v60 = vsel %vm106_vm0, %v1757_v25, 0.0  ;;  %vm1782_vm0 = vcmask 523270  }
0x1130   :  { %1759 = vadd.xlane.f32.xlu1 %v1758_v60 }
0x11a3   :  { %v1760_v10 = vpop.xlane.xlu1 %1759 }
0x11a4   :  { %v1761_v1 = vmul.f32 %v1760_v10, %v2825_v23  ;;  %v2139_v23 = vld [vmem:[%s3425_s3 + $0x26] ss:$0 sm:$0xff] }
0x11a6   :  { %v1762_v19 = vadd.f32 1e-05, %v1761_v1 }
0x11a8   :  { %2284 = vrsqrt.f32 %v1762_v19  ;;  %vm1769_vm7 = vweird.f32 %v1762_v19 }
0x11ae   :  { %v2285_v8 = vpop.eup %2284 }
0x11af   :  { %v1764_v20 = vmul.f32 %v2285_v8, %v1762_v19  ;;  %vm1770_vm6 = vweird.f32 %v2285_v8 }
0x11b0   :  { %vm1771_vm8 = vmor %vm1769_vm7, %vm1770_vm6 }
0x11b1   :  { %v1765_v49 = vmul.f32 %v2285_v8, %v1764_v20 }
0x11b3   :  { %v1766_v39 = vmul.f32 0.5, %v1765_v49 }
0x11b5   :  { %v1767_v42 = vsub.f32 1.5, %v1766_v39 }
0x11b7   :  { %v1768_v17 = vmul.f32 %v2285_v8, %v1767_v42 }
0x11b9   :  { %v1772_v9 = vsel %vm1771_vm8, %v2285_v8, %v1768_v17 }
0x11ba   :  { %v1773_v14 = vmul.f32 %v1772_v9, %v1756_v26 }
0x11bc   :  { %v1775_v43 = vmul.f32 %v2138_v7, %v1773_v14 }
0x11be   :  { %v1777_v31 = vadd.f32 %v2139_v23, %v1775_v43 }
0x11c0   :  { %v1781_v45 = vmul.f32 %v2140_v63, %v1777_v31 }
0x11c2   :  { %v1783_v51 = vsel %vm1782_vm0, %v1781_v45, 0.0 }
0x11c3   :  { %1784 = vadd.xlane.f32.xlu2 %v1783_v51 }
0x1236   :  { %v1785_v12 = vpop.xlane.xlu2 %1784 }
0x1237   :  { %v1787_v0 = vadd.f32 %v2141_v48, %v1785_v12 }
0x1239   :  { %1789 = vst.msk [vmem:[%s3428_s5 - $0x6] sm:$0xc0] %vm1788_vm9, %v1787_v0 }

</bundles_post_ra>
